<compile_context>
chip_gen: v7x
topology: tpu7x:2x2x1
jax: 0.10.0
libtpu: 0.0.40
codegen_flags: <defaults>
</compile_context>

<pallas_src>
import functools
import math

import jax
import jax.numpy as jnp
from jax import lax
from jax.experimental import pallas as pl
from jax.experimental.pallas import tpu as pltpu


def _round_up(x, m):
    return ((x + m - 1) // m) * m


# ------------------------- hardware-aware config ---------------------------- #

def _tpu_vmem_capacity():
    try:
        return int(pltpu.get_tpu_info().vmem_capacity_bytes)
    except Exception:
        return 128 * 1024 * 1024  # v5e / v6e physical VMEM


_VMEM_CAP = _tpu_vmem_capacity()
# Leave ~25% headroom for Mosaic-internal scratch; never exceed 100 MiB.
_VMEM_LIMIT = min(int(_VMEM_CAP * 3 // 4), 100 * 1024 * 1024)
# v7x (64 MiB/TC) -> 256-row tiles; v5e/v6e (128 MiB) -> 512 (measured ~85% of
# HBM roofline at 512-row tiles vs ~63% at 256).
_ROW_TILE_TARGET = 256 if _VMEM_CAP <= 64 * 1024 * 1024 else 512


def _cparams(n_parallel):
    return pltpu.CompilerParams(
        dimension_semantics=("parallel",) * n_parallel,
        vmem_limit_bytes=_VMEM_LIMIT)


def _inv(i):
    # weights / per-channel params stay resident in VMEM across row tiles
    return (0, 0)


# ----------------------------- Pallas kernels ------------------------------- #

def _layernorm_f32(x, g, b):
    # bert_pytorch LayerNorm: g * (x - mean) / (std + eps) + b,
    # unbiased std (ddof=1), eps added to std (not var), eps=1e-6.
    d = x.shape[-1]
    mean = jnp.mean(x, axis=-1, keepdims=True)
    diff = x - mean
    var = jnp.sum(diff * diff, axis=-1, keepdims=True) / (d - 1)
    return g * diff / (jnp.sqrt(var) + 1e-6) + b


def _ln_matmul_kernel(x_ref, g_ref, b_ref, w_ref, bias_ref, o_ref):
    # o = LayerNorm(x) @ W + bias     x:(tm,H) f32, W:(H,N) bf16, o:(tm,N) bf16
    h = _layernorm_f32(x_ref[...].astype(jnp.float32), g_ref[...], b_ref[...])
    o_ref[...] = (
        jnp.dot(h.astype(jnp.bfloat16), w_ref[...],
                preferred_element_type=jnp.float32) + bias_ref[...]
    ).astype(o_ref.dtype)


def _attention_kernel(mask_ref, q_ref, k_ref, v_ref, o_ref):
    # One (batch, head) pair per grid step; q/k/v/o blocks are (1, 1, S, d), so
    # the head dim is the full trailing axis: dense DMAs, unmasked stores.
    q = q_ref[0, 0]                      # (S, d) bf16
    k = k_ref[0, 0]                      # (S, d) bf16
    v = v_ref[0, 0]                      # (S, d) bf16
    d = q.shape[-1]
    scale = jnp.float32(1.0 / math.sqrt(d))
    # fold 1/sqrt(d) into q: S*d multiplies instead of S*S
    qs = (q.astype(jnp.float32) * scale).astype(jnp.bfloat16)
    # contract the d axis of both operands directly (no k.T relayout).
    # TODO(synk): verify with pl.lower_as_mlir that no vxpose is inserted on v6e.
    s = lax.dot_general(qs, k, (((1,), (1,)), ((), ())),
                        preferred_element_type=jnp.float32)          # (S, S) f32
    # key-padding mask (1, S) broadcasts over the query axis for free; fully
    # masked rows degenerate to a uniform distribution (matches bert_pytorch).
    s = jnp.where(mask_ref[0] > 0, s, jnp.float32(-1e9))
    s = s - jnp.max(s, axis=-1, keepdims=True)
    p = jnp.exp(s)
    p = p * pl.reciprocal(jnp.sum(p, axis=-1, keepdims=True), approx=True)
    o = jnp.dot(p.astype(jnp.bfloat16), v, preferred_element_type=jnp.float32)
    o_ref[0, 0] = o.astype(o_ref.dtype)


def _proj_residual_kernel(a_ref, w_ref, b_ref, res_ref, o_ref):
    # o = a @ Wo + bo + residual     a:(tm,H) bf16, Wo:(H,H) bf16, o:(tm,H) f32
    o_ref[...] = (
        jnp.dot(a_ref[...], w_ref[...], preferred_element_type=jnp.float32)
        + b_ref[...] + res_ref[...]
    ).astype(o_ref.dtype)


def _ln_ffn_residual_kernel(x_ref, g_ref, b_ref, w1_ref, b1_ref, w2_ref, b2_ref,
                            o_ref):
    # o = x + GELU(LayerNorm(x) @ W1 + b1) @ W2 + b2   (dropout = identity in eval)
    x = x_ref[...].astype(jnp.float32)
    h = _layernorm_f32(x, g_ref[...], b_ref[...])
    t = (jnp.dot(h.astype(jnp.bfloat16), w1_ref[...],
                 preferred_element_type=jnp.float32) + b1_ref[...])
    # bert_pytorch tanh-approx GELU, kept in f32 (v5e has no bf16 VPU/EUP).
    t = 0.5 * t * (1.0 + jnp.tanh(0.7978845608028654 * (t + 0.044715 * t * t * t)))
    o_ref[...] = (
        jnp.dot(t.astype(jnp.bfloat16), w2_ref[...],
                preferred_element_type=jnp.float32) + b2_ref[...] + x
    ).astype(o_ref.dtype)


def _mlm_kernel(x_ref, w_ref, b_ref, o_ref):
    # MaskedLogModel: LogSoftmax(Linear(x), dim=-1); padded vocab kept in the
    # lane dimension so the reductions run on full vregs and stores are dense.
    logits = (jnp.dot(x_ref[...].astype(jnp.bfloat16), w_ref[...],
                      preferred_element_type=jnp.float32) + b_ref[...])
    m = jnp.max(logits, axis=-1, keepdims=True)
    z = logits - m
    lse = jnp.log(jnp.sum(jnp.exp(z), axis=-1, keepdims=True))
    o_ref[...] = (z - lse).astype(o_ref.dtype)


# ------------------------------- wrappers ------------------------------------ #

def ln_matmul(x, g, b, w, bias, *, tm):
    M, H = x.shape
    N = w.shape[1]
    ce = pl.CostEstimate(flops=2 * M * H * N, transcendentals=M,
                         bytes_accessed=4 * M * H + 2 * H * N + 2 * M * N)
    return pl.pallas_call(
        _ln_matmul_kernel,
        out_shape=jax.ShapeDtypeStruct((M, N), jnp.bfloat16),
        grid=(M // tm,),
        in_specs=[
            pl.BlockSpec((tm, H), lambda i: (i, 0)),
            pl.BlockSpec((1, H), _inv),
            pl.BlockSpec((1, H), _inv),
            pl.BlockSpec((H, N), _inv),
            pl.BlockSpec((1, N), _inv),
        ],
        out_specs=pl.BlockSpec((tm, N), lambda i: (i, 0)),
        compiler_params=_cparams(1),
        cost_estimate=ce,
    )(x, g.reshape(1, H), b.reshape(1, H), w, bias.reshape(1, N))


def attention(q, k, v, key_mask):
    # q, k, v: (B, nh, S, d) bf16; key_mask: (B, 1, S) int32
    B, nh, S, d = q.shape
    ce = pl.CostEstimate(flops=4 * B * nh * S * S * d,
                         transcendentals=B * nh * S * S,
                         bytes_accessed=8 * B * nh * S * d + 4 * B * S)
    return pl.pallas_call(
        _attention_kernel,
        out_shape=jax.ShapeDtypeStruct((B, nh, S, d), jnp.bfloat16),
        grid=(B, nh),
        in_specs=[
            pl.BlockSpec((1, 1, S), lambda bi, hi: (bi, 0, 0)),
            pl.BlockSpec((1, 1, S, d), lambda bi, hi: (bi, hi, 0, 0)),
            pl.BlockSpec((1, 1, S, d), lambda bi, hi: (bi, hi, 0, 0)),
            pl.BlockSpec((1, 1, S, d), lambda bi, hi: (bi, hi, 0, 0)),
        ],
        out_specs=pl.BlockSpec((1, 1, S, d), lambda bi, hi: (bi, hi, 0, 0)),
        compiler_params=_cparams(2),
        cost_estimate=ce,
    )(key_mask, q, k, v)


def proj_residual(a, w, b, res, *, tm):
    M, H = res.shape
    ce = pl.CostEstimate(flops=2 * M * H * H, transcendentals=0,
                         bytes_accessed=10 * M * H + 2 * H * H)
    return pl.pallas_call(
        _proj_residual_kernel,
        out_shape=jax.ShapeDtypeStruct((M, H), jnp.float32),
        grid=(M // tm,),
        in_specs=[
            pl.BlockSpec((tm, H), lambda i: (i, 0)),
            pl.BlockSpec((H, H), _inv),
            pl.BlockSpec((1, H), _inv),
            pl.BlockSpec((tm, H), lambda i: (i, 0)),
        ],
        out_specs=pl.BlockSpec((tm, H), lambda i: (i, 0)),
        compiler_params=_cparams(1),
        cost_estimate=ce,
    )(a, w, b.reshape(1, H), res)


def ln_ffn_residual(x, g, b, w1, b1, w2, b2, *, tm):
    M, H = x.shape
    F = w1.shape[1]
    ce = pl.CostEstimate(flops=4 * M * H * F, transcendentals=M * (F + 1),
                         bytes_accessed=8 * M * H + 4 * H * F)
    return pl.pallas_call(
        _ln_ffn_residual_kernel,
        out_shape=jax.ShapeDtypeStruct((M, H), jnp.float32),
        grid=(M // tm,),
        in_specs=[
            pl.BlockSpec((tm, H), lambda i: (i, 0)),
            pl.BlockSpec((1, H), _inv),
            pl.BlockSpec((1, H), _inv),
            pl.BlockSpec((H, F), _inv),
            pl.BlockSpec((1, F), _inv),
            pl.BlockSpec((F, H), _inv),
            pl.BlockSpec((1, H), _inv),
        ],
        out_specs=pl.BlockSpec((tm, H), lambda i: (i, 0)),
        compiler_params=_cparams(1),
        cost_estimate=ce,
    )(x, g.reshape(1, H), b.reshape(1, H),
      w1, b1.reshape(1, F), w2, b2.reshape(1, H))


def mask_lm(x, w, b, *, tm):
    M, H = x.shape
    Vp = w.shape[1]
    ce = pl.CostEstimate(flops=2 * M * H * Vp, transcendentals=M * Vp,
                         bytes_accessed=4 * M * H + 2 * H * Vp + 4 * M * Vp)
    return pl.pallas_call(
        _mlm_kernel,
        out_shape=jax.ShapeDtypeStruct((M, Vp), jnp.float32),
        grid=(M // tm,),
        in_specs=[
            pl.BlockSpec((tm, H), lambda i: (i, 0)),
            pl.BlockSpec((H, Vp), _inv),
            pl.BlockSpec((1, Vp), _inv),
        ],
        out_specs=pl.BlockSpec((tm, Vp), lambda i: (i, 0)),
        compiler_params=_cparams(1),
        cost_estimate=ce,
    )(x, w, b.reshape(1, Vp))


# ------------------------------- BERTLog ------------------------------------- #

def sinusoidal_pos_emb(max_len, d_model):
    pos = jnp.arange(max_len, dtype=jnp.float32)[:, None]
    div = jnp.exp(jnp.arange(0, d_model, 2, dtype=jnp.float32)
                  * (-math.log(10000.0) / d_model))
    pe = jnp.zeros((max_len, d_model), dtype=jnp.float32)
    pe = pe.at[:, 0::2].set(jnp.sin(pos * div))
    pe = pe.at[:, 1::2].set(jnp.cos(pos * div))
    return pe


def init_params(key, *, hidden, n_heads, n_layers, vocab, max_len):
    ff = 4 * hidden
    keys = iter(jax.random.split(key, 4 + n_layers * 12))
    nrm = lambda k, shape: (0.02 * jax.random.normal(k, shape)).astype(jnp.float32)
    bf16 = lambda a: a.astype(jnp.bfloat16)   # MXU-side weights live in bf16

    tok_emb = nrm(next(keys), (vocab, hidden)).at[0].set(0.0)  # padding_idx=0
    layers = []
    for _ in range(n_layers):
        wq = nrm(next(keys), (hidden, hidden))
        wk = nrm(next(keys), (hidden, hidden))
        wv = nrm(next(keys), (hidden, hidden))
        layers.append(dict(
            ln1_g=jnp.ones((hidden,), jnp.float32), ln1_b=jnp.zeros((hidden,), jnp.float32),
            wqkv=bf16(jnp.concatenate([wq, wk, wv], axis=1)),        # fused QKV weight
            bqkv=jnp.zeros((3 * hidden,), jnp.float32),
            wo=bf16(nrm(next(keys), (hidden, hidden))), bo=jnp.zeros((hidden,), jnp.float32),
            ln2_g=jnp.ones((hidden,), jnp.float32), ln2_b=jnp.zeros((hidden,), jnp.float32),
            w1=bf16(nrm(next(keys), (hidden, ff))), b1=jnp.zeros((ff,), jnp.float32),
            w2=bf16(nrm(next(keys), (ff, hidden))), b2=jnp.zeros((hidden,), jnp.float32),
        ))
    # MLM head: pad vocab to a multiple of 128 so the output block is lane-dense;
    # padded columns get zero weights and a -1e30 bias -> log-softmax over the
    # real vocab is numerically unchanged (padded probs underflow to 0).
    v_pad = _round_up(vocab, 128)
    mlm_w = nrm(next(keys), (hidden, vocab))
    mlm_w = bf16(jnp.pad(mlm_w, ((0, 0), (0, v_pad - vocab))))
    mlm_b = jnp.concatenate([jnp.zeros((vocab,), jnp.float32),
                             jnp.full((v_pad - vocab,), -1e30, jnp.float32)])
    return dict(
        hidden=hidden, n_heads=n_heads, vocab=vocab,
        tok_emb=tok_emb, pos_emb=sinusoidal_pos_emb(max_len, hidden),
        layers=layers, mlm_w=mlm_w, mlm_b=mlm_b)


def bert_log_forward(params, tokens, context_embed=None):
    B, S = tokens.shape
    H = params["hidden"]
    nh = params["n_heads"]
    d = H // nh
    V = params["vocab"]
    M = B * S

    # Row tile: generation-aware target; pad M up to a tile multiple so the tile
    # never degenerates to an awkward divisor or the whole array.
    tm = _ROW_TILE_TARGET if M >= _ROW_TILE_TARGET else _round_up(M, 8)
    M_pad = _round_up(M, tm)

    # key-padding mask kept as a tiny (B, 1, S) int32 tensor; broadcast to
    # (S, S) inside the attention kernel (no S x S mask ever materialized).
    key_mask = (tokens > 0).astype(jnp.int32).reshape(B, 1, S)

    # embedding (token + sinusoidal position); dropout = identity in eval
    x = params["tok_emb"][tokens] + params["pos_emb"][None, :S, :]
    if context_embed is not None:
        # TODO(synk): BERT class source not provided; assume context_embed is added to embeddings.
        x = x + context_embed
    x = x.reshape(M, H).astype(jnp.float32)
    if M_pad != M:
        x = jnp.pad(x, ((0, M_pad - M), (0, 0)))

    for layer in params["layers"]:
        # --- attention sublayer: fused LN+QKV -> per-(batch,head) SDPA -> proj+res ---
        qkv = ln_matmul(x, layer["ln1_g"], layer["ln1_b"],
                        layer["wqkv"], layer["bqkv"], tm=tm)            # (M_pad, 3H) bf16
        # head-major (B, nh, S, d) layout so every attention block is lane-dense
        qkv_h = qkv[:M].reshape(B, S, 3, nh, d).transpose(2, 0, 3, 1, 4)
        a = attention(qkv_h[0], qkv_h[1], qkv_h[2], key_mask)           # (B, nh, S, d) bf16
        a = a.transpose(0, 2, 1, 3).reshape(M, H)                       # (M, H) bf16
        if M_pad != M:
            a = jnp.pad(a, ((0, M_pad - M), (0, 0)))
        x = proj_residual(a, layer["wo"], layer["bo"], x, tm=tm)        # (M_pad, H) f32
        # --- feed-forward sublayer: LN -> W1 -> GELU -> W2 + residual in one kernel ---
        x = ln_ffn_residual(x, layer["ln2_g"], layer["ln2_b"],
                            layer["w1"], layer["b1"], layer["w2"], layer["b2"], tm=tm)

    log_probs = mask_lm(x, params["mlm_w"], params["mlm_b"], tm=tm)     # (M_pad, Vp)
    log_probs = log_probs[:M, :V].reshape(B, S, V)
    x = x[:M].reshape(B, S, H)
    return {"logkey_output": log_probs, "cls_output": x[:, 0]}


# --------------------------------- main --------------------------------------- #

if __name__ == "__main__":
    B, S, H, NH, L, V = 2, 8, 32, 4, 2, 40

    key = jax.random.PRNGKey(0)
    pkey, tkey = jax.random.split(key)
    params = init_params(pkey, hidden=H, n_heads=NH, n_layers=L, vocab=V, max_len=S)

    tokens = jax.random.randint(tkey, (B, S), minval=1, maxval=V, dtype=jnp.int32)
    tokens = tokens.at[:, -2:].set(0)  # trailing padding (idx 0) exercises the attention mask

    fwd = jax.jit(functools.partial(bert_log_forward, params))
    out = fwd(tokens)
    jax.block_until_ready(out)

    assert out["logkey_output"].shape == (B, S, V)
    assert out["logkey_output"].dtype == jnp.float32
    assert out["cls_output"].shape == (B, H)
    # log-softmax rows must normalize to ~1 in prob space (padded vocab columns
    # contribute ~0 mass by construction)
    assert jnp.allclose(jnp.exp(out["logkey_output"]).sum(-1), 1.0, atol=1e-4)

    print("KERNEL_OK")
</pallas_src>

<mosaic_0001>
module attributes {stable_mosaic.version = 11 : i64} {
  func.func @_proj_residual_kernel(%arg0: i32, %arg1: memref<16x32xbf16, #tpu.memory_space<vmem>>, %arg2: memref<32x32xbf16, #tpu.memory_space<vmem>>, %arg3: memref<1x32xf32, #tpu.memory_space<vmem>>, %arg4: memref<16x32xf32, #tpu.memory_space<vmem>>, %arg5: memref<16x32xf32, #tpu.memory_space<vmem>>) attributes {dimension_semantics = [#tpu.dimension_semantics<parallel>], iteration_bounds = array<i64: 1>, scalar_prefetch = 0 : i64, scratch_operands = 0 : i64, tpu.core_type = #tpu.core_type<tc>, window_params = [{transform_indices = @transform_0, window_bounds = array<i64: 16, 32>}, {pipeline_mode = #tpu.pipeline_mode<synchronous>, transform_indices = @transform_1, window_bounds = array<i64: 32, 32>}, {pipeline_mode = #tpu.pipeline_mode<synchronous>, transform_indices = @transform_2, window_bounds = array<i64: 1, 32>}, {transform_indices = @transform_3, window_bounds = array<i64: 16, 32>}, {transform_indices = @transform_4, window_bounds = array<i64: 16, 32>}]} {
    %c0 = arith.constant 0 : index
    %c0_0 = arith.constant 0 : index
    %0 = vector.load %arg1[%c0, %c0_0] : memref<16x32xbf16, #tpu.memory_space<vmem>>, vector<16x32xbf16>
    %c0_1 = arith.constant 0 : index
    %c0_2 = arith.constant 0 : index
    %1 = vector.load %arg2[%c0_1, %c0_2] : memref<32x32xbf16, #tpu.memory_space<vmem>>, vector<32x32xbf16>
    %cst = arith.constant dense<0.000000e+00> : vector<16x32xf32>
    %2 = tpu.matmul %0, %1, %cst {dimension_numbers = #tpu.dot_dimension_numbers<[1], [0], [0], [1], [0, 0, 1, 1], [], []>} : vector<16x32xbf16>, vector<32x32xbf16>, vector<16x32xf32> -> vector<16x32xf32>
    %c0_3 = arith.constant 0 : index
    %c0_4 = arith.constant 0 : index
    %3 = vector.load %arg3[%c0_3, %c0_4] : memref<1x32xf32, #tpu.memory_space<vmem>>, vector<1x32xf32>
    %4 = vector.broadcast %3 : vector<1x32xf32> to vector<16x32xf32>
    %5 = arith.addf %2, %4 : vector<16x32xf32>
    %c0_5 = arith.constant 0 : index
    %c0_6 = arith.constant 0 : index
    %6 = vector.load %arg4[%c0_5, %c0_6] : memref<16x32xf32, #tpu.memory_space<vmem>>, vector<16x32xf32>
    %7 = arith.addf %5, %6 : vector<16x32xf32>
    %c0_7 = arith.constant 0 : index
    %c0_8 = arith.constant 0 : index
    %8 = vector.load %arg5[%c0_7, %c0_8] : memref<16x32xf32, #tpu.memory_space<vmem>>, vector<16x32xf32>
    tpu.vector_store %arg5[%c0_7, %c0_8], %7 {strides = array<i32>} : memref<16x32xf32, #tpu.memory_space<vmem>>, vector<16x32xf32>,
    return
  }
  func.func @transform_0(%arg0: i32) -> (i32, i32) {
    %c0_i32 = arith.constant 0 : i32
    %c0_i32_0 = arith.constant 0 : i32
    return %arg0, %c0_i32 : i32, i32
  }
  func.func @transform_1(%arg0: i32) -> (i32, i32) {
    %c0_i32 = arith.constant 0 : i32
    %c0_i32_0 = arith.constant 0 : i32
    %c0_i32_1 = arith.constant 0 : i32
    return %c0_i32, %c0_i32_0 : i32, i32
  }
  func.func @transform_2(%arg0: i32) -> (i32, i32) {
    %c0_i32 = arith.constant 0 : i32
    %c0_i32_0 = arith.constant 0 : i32
    %c0_i32_1 = arith.constant 0 : i32
    return %c0_i32, %c0_i32_0 : i32, i32
  }
  func.func @transform_3(%arg0: i32) -> (i32, i32) {
    %c0_i32 = arith.constant 0 : i32
    %c0_i32_0 = arith.constant 0 : i32
    return %arg0, %c0_i32 : i32, i32
  }
  func.func @transform_4(%arg0: i32) -> (i32, i32) {
    %c0_i32 = arith.constant 0 : i32
    %c0_i32_0 = arith.constant 0 : i32
    return %arg0, %c0_i32 : i32, i32
  }
}

module attributes {stable_mosaic.version = 11 : i64} {
  func.func @_ln_matmul_kernel(%arg0: i32, %arg1: memref<16x32xf32, #tpu.memory_space<vmem>>, %arg2: memref<1x32xf32, #tpu.memory_space<vmem>>, %arg3: memref<1x32xf32, #tpu.memory_space<vmem>>, %arg4: memref<32x96xbf16, #tpu.memory_space<vmem>>, %arg5: memref<1x96xf32, #tpu.memory_space<vmem>>, %arg6: memref<16x96xbf16, #tpu.memory_space<vmem>>) attributes {dimension_semantics = [#tpu.dimension_semantics<parallel>], iteration_bounds = array<i64: 1>, scalar_prefetch = 0 : i64, scratch_operands = 0 : i64, tpu.core_type = #tpu.core_type<tc>, window_params = [{transform_indices = @transform_0, window_bounds = array<i64: 16, 32>}, {pipeline_mode = #tpu.pipeline_mode<synchronous>, transform_indices = @transform_1, window_bounds = array<i64: 1, 32>}, {pipeline_mode = #tpu.pipeline_mode<synchronous>, transform_indices = @transform_2, window_bounds = array<i64: 1, 32>}, {pipeline_mode = #tpu.pipeline_mode<synchronous>, transform_indices = @transform_3, window_bounds = array<i64: 32, 96>}, {pipeline_mode = #tpu.pipeline_mode<synchronous>, transform_indices = @transform_4, window_bounds = array<i64: 1, 96>}, {transform_indices = @transform_5, window_bounds = array<i64: 16, 96>}]} {
    %c0 = arith.constant 0 : index
    %c0_0 = arith.constant 0 : index
    %0 = vector.load %arg1[%c0, %c0_0] : memref<16x32xf32, #tpu.memory_space<vmem>>, vector<16x32xf32>
    %c0_1 = arith.constant 0 : index
    %c0_2 = arith.constant 0 : index
    %1 = vector.load %arg2[%c0_1, %c0_2] : memref<1x32xf32, #tpu.memory_space<vmem>>, vector<1x32xf32>
    %c0_3 = arith.constant 0 : index
    %c0_4 = arith.constant 0 : index
    %2 = vector.load %arg3[%c0_3, %c0_4] : memref<1x32xf32, #tpu.memory_space<vmem>>, vector<1x32xf32>
    %cst = arith.constant dense<0.000000e+00> : vector<16xf32>
    %3 = vector.multi_reduction <add>, %0, %cst [1] : vector<16x32xf32> to vector<16xf32>
    %4 = vector.shape_cast %3 : vector<16xf32> to vector<16x1xf32>
    %cst_5 = arith.constant 3.200000e+01 : f32
    %5 = vector.broadcast %cst_5 : f32 to vector<16x1xf32>
    %6 = arith.divf %4, %5 : vector<16x1xf32>
    %7 = vector.broadcast %6 : vector<16x1xf32> to vector<16x32xf32>
    %8 = arith.subf %0, %7 : vector<16x32xf32>
    %9 = arith.mulf %8, %8 : vector<16x32xf32>
    %cst_6 = arith.constant dense<0.000000e+00> : vector<16xf32>
    %10 = vector.multi_reduction <add>, %9, %cst_6 [1] : vector<16x32xf32> to vector<16xf32>
    %11 = vector.shape_cast %10 : vector<16xf32> to vector<16x1xf32>
    %cst_7 = arith.constant 3.100000e+01 : f32
    %12 = vector.broadcast %cst_7 : f32 to vector<16x1xf32>
    %13 = arith.divf %11, %12 : vector<16x1xf32>
    %14 = vector.broadcast %1 : vector<1x32xf32> to vector<16x32xf32>
    %15 = arith.mulf %14, %8 : vector<16x32xf32>
    %16 = math.sqrt %13 : vector<16x1xf32>
    %cst_8 = arith.constant 9.99999997E-7 : f32
    %17 = vector.broadcast %cst_8 : f32 to vector<16x1xf32>
    %18 = arith.addf %16, %17 : vector<16x1xf32>
    %19 = vector.broadcast %18 : vector<16x1xf32> to vector<16x32xf32>
    %20 = arith.divf %15, %19 : vector<16x32xf32>
    %21 = vector.broadcast %2 : vector<1x32xf32> to vector<16x32xf32>
    %22 = arith.addf %20, %21 : vector<16x32xf32>
    %23 = arith.truncf %22 : vector<16x32xf32> to vector<16x32xbf16>
    %c0_9 = arith.constant 0 : index
    %c0_10 = arith.constant 0 : index
    %24 = vector.load %arg4[%c0_9, %c0_10] : memref<32x96xbf16, #tpu.memory_space<vmem>>, vector<32x96xbf16>
    %cst_11 = arith.constant dense<0.000000e+00> : vector<16x96xf32>
    %25 = tpu.matmul %23, %24, %cst_11 {dimension_numbers = #tpu.dot_dimension_numbers<[1], [0], [0], [1], [0, 0, 1, 1], [], []>} : vector<16x32xbf16>, vector<32x96xbf16>, vector<16x96xf32> -> vector<16x96xf32>
    %c0_12 = arith.constant 0 : index
    %c0_13 = arith.constant 0 : index
    %26 = vector.load %arg5[%c0_12, %c0_13] : memref<1x96xf32, #tpu.memory_space<vmem>>, vector<1x96xf32>
    %27 = vector.broadcast %26 : vector<1x96xf32> to vector<16x96xf32>
    %28 = arith.addf %25, %27 : vector<16x96xf32>
    %29 = arith.truncf %28 : vector<16x96xf32> to vector<16x96xbf16>
    %c0_14 = arith.constant 0 : index
    %c0_15 = arith.constant 0 : index
    %30 = vector.load %arg6[%c0_14, %c0_15] : memref<16x96xbf16, #tpu.memory_space<vmem>>, vector<16x96xbf16>
    tpu.vector_store %arg6[%c0_14, %c0_15], %29 {strides = array<i32>} : memref<16x96xbf16, #tpu.memory_space<vmem>>, vector<16x96xbf16>,
    return
  }
  func.func @transform_0(%arg0: i32) -> (i32, i32) {
    %c0_i32 = arith.constant 0 : i32
    %c0_i32_0 = arith.constant 0 : i32
    return %arg0, %c0_i32 : i32, i32
  }
  func.func @transform_1(%arg0: i32) -> (i32, i32) {
    %c0_i32 = arith.constant 0 : i32
    %c0_i32_0 = arith.constant 0 : i32
    %c0_i32_1 = arith.constant 0 : i32
    return %c0_i32, %c0_i32_0 : i32, i32
  }
  func.func @transform_2(%arg0: i32) -> (i32, i32) {
    %c0_i32 = arith.constant 0 : i32
    %c0_i32_0 = arith.constant 0 : i32
    %c0_i32_1 = arith.constant 0 : i32
    return %c0_i32, %c0_i32_0 : i32, i32
  }
  func.func @transform_3(%arg0: i32) -> (i32, i32) {
    %c0_i32 = arith.constant 0 : i32
    %c0_i32_0 = arith.constant 0 : i32
    %c0_i32_1 = arith.constant 0 : i32
    return %c0_i32, %c0_i32_0 : i32, i32
  }
  func.func @transform_4(%arg0: i32) -> (i32, i32) {
    %c0_i32 = arith.constant 0 : i32
    %c0_i32_0 = arith.constant 0 : i32
    %c0_i32_1 = arith.constant 0 : i32
    return %c0_i32, %c0_i32_0 : i32, i32
  }
  func.func @transform_5(%arg0: i32) -> (i32, i32) {
    %c0_i32 = arith.constant 0 : i32
    %c0_i32_0 = arith.constant 0 : i32
    return %arg0, %c0_i32 : i32, i32
  }
}

module attributes {stable_mosaic.version = 11 : i64} {
  func.func @_attention_kernel(%arg0: i32, %arg1: i32, %arg2: memref<1x1x8xi32, #tpu.memory_space<vmem>>, %arg3: memref<1x1x8x8xbf16, #tpu.memory_space<vmem>>, %arg4: memref<1x1x8x8xbf16, #tpu.memory_space<vmem>>, %arg5: memref<1x1x8x8xbf16, #tpu.memory_space<vmem>>, %arg6: memref<1x1x8x8xbf16, #tpu.memory_space<vmem>>) attributes {dimension_semantics = [#tpu.dimension_semantics<parallel>, #tpu.dimension_semantics<parallel>], iteration_bounds = array<i64: 2, 4>, scalar_prefetch = 0 : i64, scratch_operands = 0 : i64, tpu.core_type = #tpu.core_type<tc>, window_params = [{transform_indices = @transform_0, window_bounds = array<i64: 1, 1, 8>}, {transform_indices = @transform_1, window_bounds = array<i64: 1, 1, 8, 8>}, {transform_indices = @transform_2, window_bounds = array<i64: 1, 1, 8, 8>}, {transform_indices = @transform_3, window_bounds = array<i64: 1, 1, 8, 8>}, {transform_indices = @transform_4, window_bounds = array<i64: 1, 1, 8, 8>}]} {
    %c0 = arith.constant 0 : index
    %c0_0 = arith.constant 0 : index
    %c0_1 = arith.constant 0 : index
    %c0_2 = arith.constant 0 : index
    %0 = vector.load %arg3[%c0, %c0_0, %c0_1, %c0_2] : memref<1x1x8x8xbf16, #tpu.memory_space<vmem>>, vector<1x1x8x8xbf16>
    %1 = vector.shape_cast %0 : vector<1x1x8x8xbf16> to vector<8x8xbf16>
    %c0_3 = arith.constant 0 : index
    %c0_4 = arith.constant 0 : index
    %c0_5 = arith.constant 0 : index
    %c0_6 = arith.constant 0 : index
    %2 = vector.load %arg4[%c0_3, %c0_4, %c0_5, %c0_6] : memref<1x1x8x8xbf16, #tpu.memory_space<vmem>>, vector<1x1x8x8xbf16>
    %3 = vector.shape_cast %2 : vector<1x1x8x8xbf16> to vector<8x8xbf16>
    %c0_7 = arith.constant 0 : index
    %c0_8 = arith.constant 0 : index
    %c0_9 = arith.constant 0 : index
    %c0_10 = arith.constant 0 : index
    %4 = vector.load %arg5[%c0_7, %c0_8, %c0_9, %c0_10] : memref<1x1x8x8xbf16, #tpu.memory_space<vmem>>, vector<1x1x8x8xbf16>
    %5 = vector.shape_cast %4 : vector<1x1x8x8xbf16> to vector<8x8xbf16>
    %6 = arith.extf %1 : vector<8x8xbf16> to vector<8x8xf32>
    %cst = arith.constant 0.353553385 : f32
    %7 = vector.broadcast %cst : f32 to vector<8x8xf32>
    %8 = arith.mulf %6, %7 : vector<8x8xf32>
    %9 = arith.truncf %8 : vector<8x8xf32> to vector<8x8xbf16>
    %cst_11 = arith.constant dense<0.000000e+00> : vector<8x8xf32>
    %10 = tpu.matmul %9, %3, %cst_11 {dimension_numbers = #tpu.dot_dimension_numbers<[1], [1], [0], [0], [0, 0, 1, 0], [], []>} : vector<8x8xbf16>, vector<8x8xbf16>, vector<8x8xf32> -> vector<8x8xf32>
    %c0_12 = arith.constant 0 : index
    %c0_13 = arith.constant 0 : index
    %c0_14 = arith.constant 0 : index
    %11 = vector.load %arg2[%c0_12, %c0_13, %c0_14] : memref<1x1x8xi32, #tpu.memory_space<vmem>>, vector<1x1x8xi32>
    %12 = vector.shape_cast %11 : vector<1x1x8xi32> to vector<1x8xi32>
    %c0_i32 = arith.constant 0 : i32
    %13 = vector.broadcast %c0_i32 : i32 to vector<1x8xi32>
    %14 = arith.cmpi sgt, %12, %13 : vector<1x8xi32>
    %cst_15 = arith.constant -1.000000e+09 : f32
    %15 = vector.shape_cast %14 : vector<1x8xi1> to vector<1x8xi1>
    %16 = vector.broadcast %15 : vector<1x8xi1> to vector<8x8xi1>
    %17 = vector.broadcast %cst_15 : f32 to vector<8x8xf32>
    %18 = arith.select %16, %10, %17 : vector<8x8xi1>, vector<8x8xf32>
    %cst_16 = arith.constant dense<0xFF800000> : vector<8xf32>
    %19 = vector.multi_reduction <maximumf>, %18, %cst_16 [1] : vector<8x8xf32> to vector<8xf32>
    %20 = vector.shape_cast %19 : vector<8xf32> to vector<8x1xf32>
    %21 = vector.broadcast %20 : vector<8x1xf32> to vector<8x8xf32>
    %22 = arith.subf %18, %21 : vector<8x8xf32>
    %23 = math.exp %22 : vector<8x8xf32>
    %cst_17 = arith.constant dense<0.000000e+00> : vector<8xf32>
    %24 = vector.multi_reduction <add>, %23, %cst_17 [1] : vector<8x8xf32> to vector<8xf32>
    %25 = vector.shape_cast %24 : vector<8xf32> to vector<8x1xf32>
    %26 = tpu.reciprocal %25 {approx = true} : vector<8x1xf32> -> vector<8x1xf32>
    %27 = vector.broadcast %26 : vector<8x1xf32> to vector<8x8xf32>
    %28 = arith.mulf %23, %27 : vector<8x8xf32>
    %29 = arith.truncf %28 : vector<8x8xf32> to vector<8x8xbf16>
    %cst_18 = arith.constant dense<0.000000e+00> : vector<8x8xf32>
    %30 = tpu.matmul %29, %5, %cst_18 {dimension_numbers = #tpu.dot_dimension_numbers<[1], [0], [0], [1], [0, 0, 1, 1], [], []>} : vector<8x8xbf16>, vector<8x8xbf16>, vector<8x8xf32> -> vector<8x8xf32>
    %31 = arith.truncf %30 : vector<8x8xf32> to vector<8x8xbf16>
    %c0_19 = arith.constant 0 : index
    %c0_20 = arith.constant 0 : index
    %c0_21 = arith.constant 0 : index
    %c0_22 = arith.constant 0 : index
    %32 = vector.load %arg6[%c0_19, %c0_20, %c0_21, %c0_22] : memref<1x1x8x8xbf16, #tpu.memory_space<vmem>>, vector<1x1x8x8xbf16>
    %33 = vector.shape_cast %32 : vector<1x1x8x8xbf16> to vector<8x8xbf16>
    %34 = vector.shape_cast %31 : vector<8x8xbf16> to vector<1x1x8x8xbf16>
    tpu.vector_store %arg6[%c0_19, %c0_20, %c0_21, %c0_22], %34 {strides = array<i32>} : memref<1x1x8x8xbf16, #tpu.memory_space<vmem>>, vector<1x1x8x8xbf16>,
    return
  }
  func.func @transform_0(%arg0: i32, %arg1: i32) -> (i32, i32, i32) {
    %c0_i32 = arith.constant 0 : i32
    %c0_i32_0 = arith.constant 0 : i32
    %c0_i32_1 = arith.constant 0 : i32
    return %arg0, %c0_i32, %c0_i32_0 : i32, i32, i32
  }
  func.func @transform_1(%arg0: i32, %arg1: i32) -> (i32, i32, i32, i32) {
    %c0_i32 = arith.constant 0 : i32
    %c0_i32_0 = arith.constant 0 : i32
    %c0_i32_1 = arith.constant 0 : i32
    return %arg0, %arg1, %c0_i32, %c0_i32_0 : i32, i32, i32, i32
  }
  func.func @transform_2(%arg0: i32, %arg1: i32) -> (i32, i32, i32, i32) {
    %c0_i32 = arith.constant 0 : i32
    %c0_i32_0 = arith.constant 0 : i32
    %c0_i32_1 = arith.constant 0 : i32
    return %arg0, %arg1, %c0_i32, %c0_i32_0 : i32, i32, i32, i32
  }
  func.func @transform_3(%arg0: i32, %arg1: i32) -> (i32, i32, i32, i32) {
    %c0_i32 = arith.constant 0 : i32
    %c0_i32_0 = arith.constant 0 : i32
    %c0_i32_1 = arith.constant 0 : i32
    return %arg0, %arg1, %c0_i32, %c0_i32_0 : i32, i32, i32, i32
  }
  func.func @transform_4(%arg0: i32, %arg1: i32) -> (i32, i32, i32, i32) {
    %c0_i32 = arith.constant 0 : i32
    %c0_i32_0 = arith.constant 0 : i32
    %c0_i32_1 = arith.constant 0 : i32
    return %arg0, %arg1, %c0_i32, %c0_i32_0 : i32, i32, i32, i32
  }
}

module attributes {stable_mosaic.version = 11 : i64} {
  func.func @_ln_ffn_residual_kernel(%arg0: i32, %arg1: memref<16x32xf32, #tpu.memory_space<vmem>>, %arg2: memref<1x32xf32, #tpu.memory_space<vmem>>, %arg3: memref<1x32xf32, #tpu.memory_space<vmem>>, %arg4: memref<32x128xbf16, #tpu.memory_space<vmem>>, %arg5: memref<1x128xf32, #tpu.memory_space<vmem>>, %arg6: memref<128x32xbf16, #tpu.memory_space<vmem>>, %arg7: memref<1x32xf32, #tpu.memory_space<vmem>>, %arg8: memref<16x32xf32, #tpu.memory_space<vmem>>) attributes {dimension_semantics = [#tpu.dimension_semantics<parallel>], iteration_bounds = array<i64: 1>, scalar_prefetch = 0 : i64, scratch_operands = 0 : i64, tpu.core_type = #tpu.core_type<tc>, window_params = [{transform_indices = @transform_0, window_bounds = array<i64: 16, 32>}, {pipeline_mode = #tpu.pipeline_mode<synchronous>, transform_indices = @transform_1, window_bounds = array<i64: 1, 32>}, {pipeline_mode = #tpu.pipeline_mode<synchronous>, transform_indices = @transform_2, window_bounds = array<i64: 1, 32>}, {pipeline_mode = #tpu.pipeline_mode<synchronous>, transform_indices = @transform_3, window_bounds = array<i64: 32, 128>}, {pipeline_mode = #tpu.pipeline_mode<synchronous>, transform_indices = @transform_4, window_bounds = array<i64: 1, 128>}, {pipeline_mode = #tpu.pipeline_mode<synchronous>, transform_indices = @transform_5, window_bounds = array<i64: 128, 32>}, {pipeline_mode = #tpu.pipeline_mode<synchronous>, transform_indices = @transform_6, window_bounds = array<i64: 1, 32>}, {transform_indices = @transform_7, window_bounds = array<i64: 16, 32>}]} {
    %c0 = arith.constant 0 : index
    %c0_0 = arith.constant 0 : index
    %0 = vector.load %arg1[%c0, %c0_0] : memref<16x32xf32, #tpu.memory_space<vmem>>, vector<16x32xf32>
    %c0_1 = arith.constant 0 : index
    %c0_2 = arith.constant 0 : index
    %1 = vector.load %arg2[%c0_1, %c0_2] : memref<1x32xf32, #tpu.memory_space<vmem>>, vector<1x32xf32>
    %c0_3 = arith.constant 0 : index
    %c0_4 = arith.constant 0 : index
    %2 = vector.load %arg3[%c0_3, %c0_4] : memref<1x32xf32, #tpu.memory_space<vmem>>, vector<1x32xf32>
    %cst = arith.constant dense<0.000000e+00> : vector<16xf32>
    %3 = vector.multi_reduction <add>, %0, %cst [1] : vector<16x32xf32> to vector<16xf32>
    %4 = vector.shape_cast %3 : vector<16xf32> to vector<16x1xf32>
    %cst_5 = arith.constant 3.200000e+01 : f32
    %5 = vector.broadcast %cst_5 : f32 to vector<16x1xf32>
    %6 = arith.divf %4, %5 : vector<16x1xf32>
    %7 = vector.broadcast %6 : vector<16x1xf32> to vector<16x32xf32>
    %8 = arith.subf %0, %7 : vector<16x32xf32>
    %9 = arith.mulf %8, %8 : vector<16x32xf32>
    %cst_6 = arith.constant dense<0.000000e+00> : vector<16xf32>
    %10 = vector.multi_reduction <add>, %9, %cst_6 [1] : vector<16x32xf32> to vector<16xf32>
    %11 = vector.shape_cast %10 : vector<16xf32> to vector<16x1xf32>
    %cst_7 = arith.constant 3.100000e+01 : f32
    %12 = vector.broadcast %cst_7 : f32 to vector<16x1xf32>
    %13 = arith.divf %11, %12 : vector<16x1xf32>
    %14 = vector.broadcast %1 : vector<1x32xf32> to vector<16x32xf32>
    %15 = arith.mulf %14, %8 : vector<16x32xf32>
    %16 = math.sqrt %13 : vector<16x1xf32>
    %cst_8 = arith.constant 9.99999997E-7 : f32
    %17 = vector.broadcast %cst_8 : f32 to vector<16x1xf32>
    %18 = arith.addf %16, %17 : vector<16x1xf32>
    %19 = vector.broadcast %18 : vector<16x1xf32> to vector<16x32xf32>
    %20 = arith.divf %15, %19 : vector<16x32xf32>
    %21 = vector.broadcast %2 : vector<1x32xf32> to vector<16x32xf32>
    %22 = arith.addf %20, %21 : vector<16x32xf32>
    %23 = arith.truncf %22 : vector<16x32xf32> to vector<16x32xbf16>
    %c0_9 = arith.constant 0 : index
    %c0_10 = arith.constant 0 : index
    %24 = vector.load %arg4[%c0_9, %c0_10] : memref<32x128xbf16, #tpu.memory_space<vmem>>, vector<32x128xbf16>
    %cst_11 = arith.constant dense<0.000000e+00> : vector<16x128xf32>
    %25 = tpu.matmul %23, %24, %cst_11 {dimension_numbers = #tpu.dot_dimension_numbers<[1], [0], [0], [1], [0, 0, 1, 1], [], []>} : vector<16x32xbf16>, vector<32x128xbf16>, vector<16x128xf32> -> vector<16x128xf32>
    %c0_12 = arith.constant 0 : index
    %c0_13 = arith.constant 0 : index
    %26 = vector.load %arg5[%c0_12, %c0_13] : memref<1x128xf32, #tpu.memory_space<vmem>>, vector<1x128xf32>
    %27 = vector.broadcast %26 : vector<1x128xf32> to vector<16x128xf32>
    %28 = arith.addf %25, %27 : vector<16x128xf32>
    %cst_14 = arith.constant 5.000000e-01 : f32
    %29 = vector.broadcast %cst_14 : f32 to vector<16x128xf32>
    %30 = arith.mulf %29, %28 : vector<16x128xf32>
    %cst_15 = arith.constant 4.471500e-02 : f32
    %31 = vector.broadcast %cst_15 : f32 to vector<16x128xf32>
    %32 = arith.mulf %31, %28 : vector<16x128xf32>
    %33 = arith.mulf %32, %28 : vector<16x128xf32>
    %34 = arith.mulf %33, %28 : vector<16x128xf32>
    %35 = arith.addf %28, %34 : vector<16x128xf32>
    %cst_16 = arith.constant 0.797884583 : f32
    %36 = vector.broadcast %cst_16 : f32 to vector<16x128xf32>
    %37 = arith.mulf %36, %35 : vector<16x128xf32>
    %38 = math.tanh %37 : vector<16x128xf32>
    %cst_17 = arith.constant 1.000000e+00 : f32
    %39 = vector.broadcast %cst_17 : f32 to vector<16x128xf32>
    %40 = arith.addf %39, %38 : vector<16x128xf32>
    %41 = arith.mulf %30, %40 : vector<16x128xf32>
    %42 = arith.truncf %41 : vector<16x128xf32> to vector<16x128xbf16>
    %c0_18 = arith.constant 0 : index
    %c0_19 = arith.constant 0 : index
    %43 = vector.load %arg6[%c0_18, %c0_19] : memref<128x32xbf16, #tpu.memory_space<vmem>>, vector<128x32xbf16>
    %cst_20 = arith.constant dense<0.000000e+00> : vector<16x32xf32>
    %44 = tpu.matmul %42, %43, %cst_20 {dimension_numbers = #tpu.dot_dimension_numbers<[1], [0], [0], [1], [0, 0, 1, 1], [], []>} : vector<16x128xbf16>, vector<128x32xbf16>, vector<16x32xf32> -> vector<16x32xf32>
    %c0_21 = arith.constant 0 : index
    %c0_22 = arith.constant 0 : index
    %45 = vector.load %arg7[%c0_21, %c0_22] : memref<1x32xf32, #tpu.memory_space<vmem>>, vector<1x32xf32>
    %46 = vector.broadcast %45 : vector<1x32xf32> to vector<16x32xf32>
    %47 = arith.addf %44, %46 : vector<16x32xf32>
    %48 = arith.addf %47, %0 : vector<16x32xf32>
    %c0_23 = arith.constant 0 : index
    %c0_24 = arith.constant 0 : index
    %49 = vector.load %arg8[%c0_23, %c0_24] : memref<16x32xf32, #tpu.memory_space<vmem>>, vector<16x32xf32>
    tpu.vector_store %arg8[%c0_23, %c0_24], %48 {strides = array<i32>} : memref<16x32xf32, #tpu.memory_space<vmem>>, vector<16x32xf32>,
    return
  }
  func.func @transform_0(%arg0: i32) -> (i32, i32) {
    %c0_i32 = arith.constant 0 : i32
    %c0_i32_0 = arith.constant 0 : i32
    return %arg0, %c0_i32 : i32, i32
  }
  func.func @transform_1(%arg0: i32) -> (i32, i32) {
    %c0_i32 = arith.constant 0 : i32
    %c0_i32_0 = arith.constant 0 : i32
    %c0_i32_1 = arith.constant 0 : i32
    return %c0_i32, %c0_i32_0 : i32, i32
  }
  func.func @transform_2(%arg0: i32) -> (i32, i32) {
    %c0_i32 = arith.constant 0 : i32
    %c0_i32_0 = arith.constant 0 : i32
    %c0_i32_1 = arith.constant 0 : i32
    return %c0_i32, %c0_i32_0 : i32, i32
  }
  func.func @transform_3(%arg0: i32) -> (i32, i32) {
    %c0_i32 = arith.constant 0 : i32
    %c0_i32_0 = arith.constant 0 : i32
    %c0_i32_1 = arith.constant 0 : i32
    return %c0_i32, %c0_i32_0 : i32, i32
  }
  func.func @transform_4(%arg0: i32) -> (i32, i32) {
    %c0_i32 = arith.constant 0 : i32
    %c0_i32_0 = arith.constant 0 : i32
    %c0_i32_1 = arith.constant 0 : i32
    return %c0_i32, %c0_i32_0 : i32, i32
  }
  func.func @transform_5(%arg0: i32) -> (i32, i32) {
    %c0_i32 = arith.constant 0 : i32
    %c0_i32_0 = arith.constant 0 : i32
    %c0_i32_1 = arith.constant 0 : i32
    return %c0_i32, %c0_i32_0 : i32, i32
  }
  func.func @transform_6(%arg0: i32) -> (i32, i32) {
    %c0_i32 = arith.constant 0 : i32
    %c0_i32_0 = arith.constant 0 : i32
    %c0_i32_1 = arith.constant 0 : i32
    return %c0_i32, %c0_i32_0 : i32, i32
  }
  func.func @transform_7(%arg0: i32) -> (i32, i32) {
    %c0_i32 = arith.constant 0 : i32
    %c0_i32_0 = arith.constant 0 : i32
    return %arg0, %c0_i32 : i32, i32
  }
}

module attributes {stable_mosaic.version = 11 : i64} {
  func.func @_mlm_kernel(%arg0: i32, %arg1: memref<16x32xf32, #tpu.memory_space<vmem>>, %arg2: memref<32x128xbf16, #tpu.memory_space<vmem>>, %arg3: memref<1x128xf32, #tpu.memory_space<vmem>>, %arg4: memref<16x128xf32, #tpu.memory_space<vmem>>) attributes {dimension_semantics = [#tpu.dimension_semantics<parallel>], iteration_bounds = array<i64: 1>, scalar_prefetch = 0 : i64, scratch_operands = 0 : i64, tpu.core_type = #tpu.core_type<tc>, window_params = [{transform_indices = @transform_0, window_bounds = array<i64: 16, 32>}, {pipeline_mode = #tpu.pipeline_mode<synchronous>, transform_indices = @transform_1, window_bounds = array<i64: 32, 128>}, {pipeline_mode = #tpu.pipeline_mode<synchronous>, transform_indices = @transform_2, window_bounds = array<i64: 1, 128>}, {transform_indices = @transform_3, window_bounds = array<i64: 16, 128>}]} {
    %c0 = arith.constant 0 : index
    %c0_0 = arith.constant 0 : index
    %0 = vector.load %arg1[%c0, %c0_0] : memref<16x32xf32, #tpu.memory_space<vmem>>, vector<16x32xf32>
    %1 = arith.truncf %0 : vector<16x32xf32> to vector<16x32xbf16>
    %c0_1 = arith.constant 0 : index
    %c0_2 = arith.constant 0 : index
    %2 = vector.load %arg2[%c0_1, %c0_2] : memref<32x128xbf16, #tpu.memory_space<vmem>>, vector<32x128xbf16>
    %cst = arith.constant dense<0.000000e+00> : vector<16x128xf32>
    %3 = tpu.matmul %1, %2, %cst {dimension_numbers = #tpu.dot_dimension_numbers<[1], [0], [0], [1], [0, 0, 1, 1], [], []>} : vector<16x32xbf16>, vector<32x128xbf16>, vector<16x128xf32> -> vector<16x128xf32>
    %c0_3 = arith.constant 0 : index
    %c0_4 = arith.constant 0 : index
    %4 = vector.load %arg3[%c0_3, %c0_4] : memref<1x128xf32, #tpu.memory_space<vmem>>, vector<1x128xf32>
    %5 = vector.broadcast %4 : vector<1x128xf32> to vector<16x128xf32>
    %6 = arith.addf %3, %5 : vector<16x128xf32>
    %cst_5 = arith.constant dense<0xFF800000> : vector<16xf32>
    %7 = vector.multi_reduction <maximumf>, %6, %cst_5 [1] : vector<16x128xf32> to vector<16xf32>
    %8 = vector.shape_cast %7 : vector<16xf32> to vector<16x1xf32>
    %9 = vector.broadcast %8 : vector<16x1xf32> to vector<16x128xf32>
    %10 = arith.subf %6, %9 : vector<16x128xf32>
    %11 = math.exp %10 : vector<16x128xf32>
    %cst_6 = arith.constant dense<0.000000e+00> : vector<16xf32>
    %12 = vector.multi_reduction <add>, %11, %cst_6 [1] : vector<16x128xf32> to vector<16xf32>
    %13 = vector.shape_cast %12 : vector<16xf32> to vector<16x1xf32>
    %14 = math.log %13 : vector<16x1xf32>
    %15 = vector.broadcast %14 : vector<16x1xf32> to vector<16x128xf32>
    %16 = arith.subf %10, %15 : vector<16x128xf32>
    %c0_7 = arith.constant 0 : index
    %c0_8 = arith.constant 0 : index
    %17 = vector.load %arg4[%c0_7, %c0_8] : memref<16x128xf32, #tpu.memory_space<vmem>>, vector<16x128xf32>
    tpu.vector_store %arg4[%c0_7, %c0_8], %16 {strides = array<i32>} : memref<16x128xf32, #tpu.memory_space<vmem>>, vector<16x128xf32>,
    return
  }
  func.func @transform_0(%arg0: i32) -> (i32, i32) {
    %c0_i32 = arith.constant 0 : i32
    %c0_i32_0 = arith.constant 0 : i32
    return %arg0, %c0_i32 : i32, i32
  }
  func.func @transform_1(%arg0: i32) -> (i32, i32) {
    %c0_i32 = arith.constant 0 : i32
    %c0_i32_0 = arith.constant 0 : i32
    %c0_i32_1 = arith.constant 0 : i32
    return %c0_i32, %c0_i32_0 : i32, i32
  }
  func.func @transform_2(%arg0: i32) -> (i32, i32) {
    %c0_i32 = arith.constant 0 : i32
    %c0_i32_0 = arith.constant 0 : i32
    %c0_i32_1 = arith.constant 0 : i32
    return %c0_i32, %c0_i32_0 : i32, i32
  }
  func.func @transform_3(%arg0: i32) -> (i32, i32) {
    %c0_i32 = arith.constant 0 : i32
    %c0_i32_0 = arith.constant 0 : i32
    return %arg0, %c0_i32 : i32, i32
  }
}

</mosaic_0001>

<bundles_post_ra>
// kernel: bert_log_forward.11
= control target key start
LH: loop header
LB: loop body
LE: loop exit
PB: predicated region body
PF: predicated region fallthrough
CT: control target
= control target key end

     0   :  { %9 = vsyncpa [#allocation3], 0  ;;  %s439_s0 = inlined_call_operand.hbm [shape: bf16[16,32], index: 0, kind: input, shape index: {}]   ;;  %s440_s1 = inlined_call_operand.hbm [shape: bf16[32,32], index: 1, kind: input, shape index: {}]   ;;  %s441_s2 = inlined_call_operand.hbm [shape: f32[1,32], index: 2, kind: input, shape index: {}]   ;;  %s442_s3 = inlined_call_operand.hbm [shape: f32[16,32], index: 3, kind: input, shape index: {}]   ;;  %s443_s4 = inlined_call_operand.hbm [shape: f32[16,32], index: 4, kind: output, shape index: {}]  }
   0x1   :  { %10 = vsyncpa [#allocation6], 0 }
   0x2   :  { %11 = vsyncpa [#allocation9], 0 }
   0x3   :  { %12 = vsyncpa [#allocation4], 0  ;;  %s320_s15 = smov [#allocation5]   ;;  %s321_s17 = smov [#allocation2]  }
   0x4   :  { %s30_s16 = sshll.u32 %s320_s15, 4  ;;  %s18_s18 = sshll.u32 %s321_s17, 4  ;;  %s31_s16 = int_to_ptr.vmem [resolvable:$true] %s30_s16  ;;  %s356_s18 = int_to_ptr.vmem [resolvable:$true] %s18_s18 }
   0x5   :  { %s202_s21 = scalar_lea.hbm %s440_s1, 256 }
   0x6   :  { %p203_p0 = scmp.ne.s32.totalorder %s440_s1, %s202_s21  ;;  %p206_p1 = scmp.lt.u32.totalorder %s202_s21, %s440_s1 }
   0x8   :  { %p208_p2 = pnand %p206_p1, %p203_p0 }
   0xa   :  { %211 = shalt.err (!%p208_p2)
}
   0xb   :  { %s212_s26 = scalar_lea.vmem %s31_s16, 256  ;;  %p217_p4 = scmp.lt.s32.totalorder %s31_s16, %s31_s16 }
   0xc   :  { %p213_p3 = scmp.ne.s32.totalorder %s31_s16, %s212_s26  ;;  %p218_p5 = scmp.lt.s32.totalorder %s212_s26, %s212_s26 }
   0xe   :  { %p219_p6 = por %p218_p5, %p217_p4 }
  0x10   :  { %p220_p7 = pnand %p219_p6, %p213_p3 }
  0x12   :  { %223 = shalt.err (!%p220_p7)
}
  0x13   :  { %s322_s27 = smov 64   ;;  %s323_s28 = smov 4  }
  0x14   :  { %36 = dma.hbm_to_vmem [thread:$0]  %s440_s1, 256, %s31_s16, [#allocation6], %s322_s27, %s322_s27, %s323_s28  }
  0x15   :  { %s224_s7 = scalar_lea.hbm %s439_s0, 128 }
  0x16   :  { %p225_p8 = scmp.ne.s32.totalorder %s439_s0, %s224_s7  ;;  %p228_p9 = scmp.lt.u32.totalorder %s224_s7, %s439_s0 }
  0x18   :  { %p230_p10 = pnand %p228_p9, %p225_p8 }
  0x1a   :  { %233 = shalt.err (!%p230_p10)
}
  0x1b   :  { %s234_s12 = scalar_lea.vmem %s356_s18, 128  ;;  %p239_p12 = scmp.lt.s32.totalorder %s356_s18, %s356_s18 }
  0x1c   :  { %p235_p11 = scmp.ne.s32.totalorder %s356_s18, %s234_s12  ;;  %p240_p13 = scmp.lt.s32.totalorder %s234_s12, %s234_s12 }
  0x1e   :  { %p241_p0 = por %p240_p13, %p239_p12 }
  0x20   :  { %p242_p1 = pnand %p241_p0, %p235_p11 }
  0x22   :  { %245 = shalt.err (!%p242_p1)
}
  0x23   :  { %24 = dma.hbm_to_vmem [thread:$0]  %s439_s0, 128, %s356_s18, [#allocation3], %s322_s27, %s322_s27, %s323_s28  }
  0x24   :  { %s324_s14 = smov [#allocation7]   ;;  %s325_s16 = smov [#allocation8]  }
  0x25   :  { %s43_s15 = sshll.u32 %s324_s14, 4  ;;  %s52_s17 = sshll.u32 %s325_s16, 4  ;;  %s44_s15 = int_to_ptr.vmem [resolvable:$true] %s43_s15  ;;  %s387_s17 = int_to_ptr.vmem [resolvable:$true] %s52_s17 }
  0x26   :  { %s246_s21 = scalar_lea.hbm %s441_s2, 16 }
  0x27   :  { %p247_p2 = scmp.ne.s32.totalorder %s441_s2, %s246_s21  ;;  %p250_p3 = scmp.lt.u32.totalorder %s246_s21, %s441_s2 }
  0x29   :  { %p252_p4 = pnand %p250_p3, %p247_p2 }
  0x2b   :  { %255 = shalt.err (!%p252_p4)
}
  0x2c   :  { %s256_s0 = scalar_lea.vmem %s44_s15, 16  ;;  %s260_s18 = scalar_lea.vmem %s44_s15, 32 }
  0x2d   :  { %p257_p5 = scmp.ne.s32.totalorder %s44_s15, %s256_s0  ;;  %p261_p6 = scmp.lt.s32.totalorder %s44_s15, %s44_s15 }
  0x2e   :  { %p262_p7 = scmp.lt.s32.totalorder %s260_s18, %s256_s0 }
  0x30   :  { %p263_p8 = por %p262_p7, %p261_p6 }
  0x32   :  { %p264_p9 = pnand %p263_p8, %p257_p5 }
  0x34   :  { %267 = shalt.err (!%p264_p9)
}
  0x35   :  { %46 = dma.hbm_to_vmem [thread:$0]  %s441_s2, 16, %s44_s15, [#allocation6]  }
  0x36   :  { %s268_s30 = scalar_lea.hbm %s442_s3, 256 }
  0x37   :  { %p269_p10 = scmp.ne.s32.totalorder %s442_s3, %s268_s30  ;;  %p272_p11 = scmp.lt.u32.totalorder %s268_s30, %s442_s3 }
  0x39   :  { %p274_p12 = pnand %p272_p11, %p269_p10 }
  0x3b   :  { %277 = shalt.err (!%p274_p12)
}
  0x3c   :  { %s278_s9 = scalar_lea.vmem %s387_s17, 256  ;;  %p283_p0 = scmp.lt.s32.totalorder %s387_s17, %s387_s17 }
  0x3d   :  { %p279_p13 = scmp.ne.s32.totalorder %s387_s17, %s278_s9  ;;  %p284_p1 = scmp.lt.s32.totalorder %s278_s9, %s278_s9 }
  0x3f   :  { %p285_p2 = por %p284_p1, %p283_p0 }
  0x41   :  { %p286_p3 = pnand %p285_p2, %p279_p13 }
  0x43   :  { %289 = shalt.err (!%p286_p3)
}
  0x44   :  { %s326_s2 = smov 128   ;;  %s327_s10 = smov 8  }
  0x45   :  { %58 = dma.hbm_to_vmem [thread:$0]  %s442_s3, 256, %s387_s17, [#allocation9], %s326_s2, %s326_s2, %s327_s10  }
  0x46   :  { %312 = dma.done.wait [#allocation3], 128  }
  0x47   :  { %313 = vsyncadd [#allocation3], 4294967168 }
  0x48   :  { %314 = dma.done.wait [#allocation6], 272  }
  0x49   :  { %315 = vsyncadd [#allocation6], 4294967024 }
  0x4a   :  { %316 = dma.done.wait [#allocation9], 256  }
  0x4b   :  { %317 = vsyncadd [#allocation9], 4294967040  ;;  %v328_v0 = vmov 0.0   ;;  %vm329_vm0 = vmmov 0   ;;  %v199_v1 = vld [vmem:[#allocation5] sm:$0xff]   ;;  %v200_v2 = vld [vmem:[#allocation5 + $0x8] sm:$0xff]  }
  0x4c   :  { %180 = vmatprep.subr.bf16.mxu0 %v328_v0  ;;  %184 = vmatprep.mubr.msk.bf16.mxu0 %vm329_vm0, %v328_v0  ;;  %v201_v3 = vld [vmem:[#allocation2] sm:$0xff]   ;;  %vm102_vm1 = vcmask 261120   ;;  %v172_v4 = vld [vmem:[#allocation7] ss:$0 sm:$0xff]  ;;  %s330_s3 = smov [#allocation10]  }
  0x4d   :  { %181 = vmatpush3.bf16.msra.mxu0 %v199_v1  ;;  %v147_v6 = vld [vmem:[#allocation8] sm:$0xff]  ;;  %v148_v10 = vld [vmem:[#allocation8 + $0x8] sm:$0xff]  ;;  %s158_s1 = sshll.u32 %s330_s3, 4  ;;  %s159_s1 = int_to_ptr.vmem [resolvable:$true] %s158_s1 }
  0x4e   :  { %182 = vmatprep.subr.bf16.mxu0 %v328_v0  ;;  %s290_s13 = scalar_lea.vmem %s159_s1, 256  ;;  %p295_p5 = scmp.lt.s32.totalorder %s159_s1, %s159_s1 }
  0x4f   :  { %p291_p4 = scmp.ne.s32.totalorder %s159_s1, %s290_s13  ;;  %p296_p6 = scmp.lt.s32.totalorder %s290_s13, %s290_s13 }
  0x51   :  { %183 = vmatpush3.bf16.msra.mxu0 %v200_v2  ;;  %p297_p7 = por %p296_p6, %p295_p5 }
  0x53   :  { %p298_p8 = pnand %p297_p7, %p291_p4 }
  0x54   :  { %185 = vmatmul.mubr.msk.bf16.vlgmr.msra.gmra.mrb[0].mxu0 %vm102_vm1, %v201_v3 }
 0x127   :  { %v140_v5 = vpop.f32.mrb[0].mxu0 }
 0x128   :  { %v141_v7 = vadd.f32 %v172_v4, %v140_v5  ;;  %v186_v8 = vpop.f32.mrb[1].mxu0 }
 0x129   :  { %v143_v9 = vpop.f32.mrb[2].mxu0 }
 0x12a   :  { %v149_v11 = vadd.f32 %v147_v6, %v141_v7  ;;  %v144_v12 = vadd.f32 %v172_v4, %v143_v9  ;;  %v187_v13 = vpop.f32.mrb[3].mxu0 }
 0x12c   :  { %151 = vst.msk [vmem:[#allocation10] sm:$0xff] %vm102_vm1, %v149_v11  ;;  %v150_v14 = vadd.f32 %v148_v10, %v144_v12 }
 0x12e   :  { %152 = vst.msk [vmem:[#allocation10 + $0x8] sm:$0xff] %vm102_vm1, %v150_v14 }
 0x12f   :  { %301 = shalt.err (!%p298_p8)
}
 0x130   :  { %s302_s16 = scalar_lea.hbm %s443_s4, 256 }
 0x131   :  { %p303_p9 = scmp.ne.s32.totalorder %s443_s4, %s302_s16  ;;  %p306_p10 = scmp.lt.u32.totalorder %s302_s16, %s443_s4 }
 0x133   :  { %p308_p11 = pnand %p306_p10, %p303_p9 }
 0x135   :  { %311 = shalt.err (!%p308_p11)
}
 0x136   :  { %164 = dma.vmem_to_hbm [thread:$0]  %s159_s1, 256, %s443_s4, [#allocation4], %s326_s2, %s326_s2, %s327_s10  }
 0x137   :  { %318 = dma.done.wait [#allocation4], 256  }
 0x138   :  { %319 = vsyncadd [#allocation4], 4294967040 }
 0x139   :  { %168 = vsyncpa [#allocation3], 1 }
 0x13a   :  { %169 = vsyncpa [#allocation6], 1 }
 0x13b   :  { %170 = vsyncpa [#allocation9], 1 }
 0x13c   :  { %171 = vsyncpa [#allocation4], 1 }

// kernel: bert_log_forward.9
= control target key start
LH: loop header
LB: loop body
LE: loop exit
PB: predicated region body
PF: predicated region fallthrough
CT: control target
= control target key end

     0   :  { %10 = vsyncpa [#allocation3], 0  ;;  %s560_s0 = inlined_call_operand.hbm [shape: f32[16,32], index: 0, kind: input, shape index: {}]   ;;  %s561_s1 = inlined_call_operand.hbm [shape: f32[1,32], index: 1, kind: input, shape index: {}]   ;;  %s562_s2 = inlined_call_operand.hbm [shape: f32[1,32], index: 2, kind: input, shape index: {}]   ;;  %s563_s3 = inlined_call_operand.hbm [shape: bf16[32,96], index: 3, kind: input, shape index: {}]   ;;  %s564_s4 = inlined_call_operand.hbm [shape: f32[1,96], index: 4, kind: input, shape index: {}]   ;;  %s565_s5 = inlined_call_operand.hbm [shape: bf16[16,96], index: 5, kind: output, shape index: {}]  }
   0x1   :  { %11 = vsyncpa [#allocation6], 0 }
   0x2   :  { %12 = vsyncpa [#allocation9], 0 }
   0x3   :  { %13 = vsyncpa [#allocation4], 0  ;;  %s428_s18 = smov [#allocation5]   ;;  %s429_s20 = smov [#allocation8]  }
   0x4   :  { %s32_s19 = sshll.u32 %s428_s18, 4  ;;  %s51_s21 = sshll.u32 %s429_s20, 4  ;;  %s33_s19 = int_to_ptr.vmem [resolvable:$true] %s32_s19  ;;  %s470_s21 = int_to_ptr.vmem [resolvable:$true] %s51_s21 }
   0x5   :  { %s288_s24 = scalar_lea.hbm %s561_s1, 16 }
   0x6   :  { %p289_p0 = scmp.ne.s32.totalorder %s561_s1, %s288_s24  ;;  %p292_p1 = scmp.lt.u32.totalorder %s288_s24, %s561_s1 }
   0x8   :  { %p294_p2 = pnand %p292_p1, %p289_p0 }
   0xa   :  { %297 = shalt.err (!%p294_p2)
}
   0xb   :  { %s298_s29 = scalar_lea.vmem %s33_s19, 16  ;;  %s302_s30 = scalar_lea.vmem %s33_s19, 32 }
   0xc   :  { %p299_p3 = scmp.ne.s32.totalorder %s33_s19, %s298_s29  ;;  %p303_p4 = scmp.lt.s32.totalorder %s33_s19, %s33_s19 }
   0xd   :  { %p304_p5 = scmp.lt.s32.totalorder %s302_s30, %s298_s29 }
   0xf   :  { %p305_p6 = por %p304_p5, %p303_p4 }
  0x11   :  { %p306_p7 = pnand %p305_p6, %p299_p3 }
  0x13   :  { %309 = shalt.err (!%p306_p7)
}
  0x14   :  { %35 = dma.hbm_to_vmem [thread:$0]  %s561_s1, 16, %s33_s19, [#allocation6]  }
  0x15   :  { %s310_s10 = scalar_lea.hbm %s563_s3, 256 }
  0x16   :  { %p311_p8 = scmp.ne.s32.totalorder %s563_s3, %s310_s10  ;;  %p314_p9 = scmp.lt.u32.totalorder %s310_s10, %s563_s3 }
  0x18   :  { %p316_p10 = pnand %p314_p9, %p311_p8 }
  0x1a   :  { %319 = shalt.err (!%p316_p10)
}
  0x1b   :  { %s320_s15 = scalar_lea.vmem %s470_s21, 256  ;;  %p325_p12 = scmp.lt.s32.totalorder %s470_s21, %s470_s21 }
  0x1c   :  { %p321_p11 = scmp.ne.s32.totalorder %s470_s21, %s320_s15  ;;  %p326_p13 = scmp.lt.s32.totalorder %s320_s15, %s320_s15 }
  0x1e   :  { %p327_p0 = por %p326_p13, %p325_p12 }
  0x20   :  { %p328_p1 = pnand %p327_p0, %p321_p11 }
  0x22   :  { %331 = shalt.err (!%p328_p1)
}
  0x23   :  { %s430_s1 = smov 64   ;;  %s431_s16 = smov 4  }
  0x24   :  { %57 = dma.hbm_to_vmem [thread:$0]  %s563_s3, 256, %s470_s21, [#allocation9], %s430_s1, %s430_s1, %s431_s16  }
  0x25   :  { %s432_s19 = smov [#allocation2]   ;;  %s332_s24 = scalar_lea.hbm %s560_s0, 256 }
  0x26   :  { %s19_s20 = sshll.u32 %s432_s19, 4  ;;  %p333_p2 = scmp.ne.s32.totalorder %s560_s0, %s332_s24  ;;  %s20_s20 = int_to_ptr.vmem [resolvable:$true] %s19_s20 }
  0x27   :  { %p336_p3 = scmp.lt.u32.totalorder %s332_s24, %s560_s0 }
  0x29   :  { %p338_p4 = pnand %p336_p3, %p333_p2 }
  0x2b   :  { %341 = shalt.err (!%p338_p4)
}
  0x2c   :  { %s342_s29 = scalar_lea.vmem %s20_s20, 256  ;;  %p347_p6 = scmp.lt.s32.totalorder %s20_s20, %s20_s20 }
  0x2d   :  { %p343_p5 = scmp.ne.s32.totalorder %s20_s20, %s342_s29  ;;  %p348_p7 = scmp.lt.s32.totalorder %s342_s29, %s342_s29 }
  0x2f   :  { %p349_p8 = por %p348_p7, %p347_p6 }
  0x31   :  { %p350_p9 = pnand %p349_p8, %p343_p5 }
  0x33   :  { %353 = shalt.err (!%p350_p9)
}
  0x34   :  { %s433_s3 = smov 128   ;;  %s434_s21 = smov 8  }
  0x35   :  { %25 = dma.hbm_to_vmem [thread:$0]  %s560_s0, 256, %s20_s20, [#allocation3], %s433_s3, %s433_s3, %s434_s21  }
  0x36   :  { %s435_s7 = smov [#allocation7]   ;;  %s436_s9 = smov [#allocation10]  }
  0x37   :  { %s42_s8 = sshll.u32 %s435_s7, 4  ;;  %s64_s10 = sshll.u32 %s436_s9, 4  ;;  %s43_s8 = int_to_ptr.vmem [resolvable:$true] %s42_s8  ;;  %s65_s10 = int_to_ptr.vmem [resolvable:$true] %s64_s10 }
  0x38   :  { %s354_s13 = scalar_lea.hbm %s562_s2, 16 }
  0x39   :  { %p355_p10 = scmp.ne.s32.totalorder %s562_s2, %s354_s13  ;;  %p358_p11 = scmp.lt.u32.totalorder %s354_s13, %s562_s2 }
  0x3b   :  { %p360_p12 = pnand %p358_p11, %p355_p10 }
  0x3d   :  { %363 = shalt.err (!%p360_p12)
}
  0x3e   :  { %s364_s0 = scalar_lea.vmem %s43_s8, 16  ;;  %s368_s19 = scalar_lea.vmem %s43_s8, 32 }
  0x3f   :  { %p365_p13 = scmp.ne.s32.totalorder %s43_s8, %s364_s0  ;;  %p369_p0 = scmp.lt.s32.totalorder %s43_s8, %s43_s8 }
  0x40   :  { %p370_p1 = scmp.lt.s32.totalorder %s368_s19, %s364_s0 }
  0x42   :  { %p371_p2 = por %p370_p1, %p369_p0 }
  0x44   :  { %p372_p3 = pnand %p371_p2, %p365_p13 }
  0x46   :  { %375 = shalt.err (!%p372_p3)
}
  0x47   :  { %45 = dma.hbm_to_vmem [thread:$0]  %s562_s2, 16, %s43_s8, [#allocation6]  }
  0x48   :  { %s376_s25 = scalar_lea.hbm %s564_s4, 16 }
  0x49   :  { %p377_p4 = scmp.ne.s32.totalorder %s564_s4, %s376_s25  ;;  %p380_p5 = scmp.lt.u32.totalorder %s376_s25, %s564_s4 }
  0x4b   :  { %p382_p6 = pnand %p380_p5, %p377_p4 }
  0x4d   :  { %385 = shalt.err (!%p382_p6)
}
  0x4e   :  { %s386_s3 = scalar_lea.vmem %s65_s10, 16  ;;  %s390_s21 = scalar_lea.vmem %s65_s10, 32 }
  0x4f   :  { %p387_p7 = scmp.ne.s32.totalorder %s65_s10, %s386_s3  ;;  %p391_p8 = scmp.lt.s32.totalorder %s65_s10, %s65_s10 }
  0x50   :  { %p392_p9 = scmp.lt.s32.totalorder %s390_s21, %s386_s3 }
  0x52   :  { %p393_p10 = por %p392_p9, %p391_p8 }
  0x54   :  { %p394_p11 = pnand %p393_p10, %p387_p7 }
  0x56   :  { %397 = shalt.err (!%p394_p11)
}
  0x57   :  { %67 = dma.hbm_to_vmem [thread:$0]  %s564_s4, 16, %s65_s10, [#allocation9]  }
  0x58   :  { %420 = dma.done.wait [#allocation3], 256  }
  0x59   :  { %421 = vsyncadd [#allocation3], 4294967040 }
  0x5a   :  { %422 = dma.done.wait [#allocation6], 32  }
  0x5b   :  { %423 = vsyncadd [#allocation6], 4294967264 }
  0x5c   :  { %424 = dma.done.wait [#allocation9], 272  }
  0x5d   :  { %425 = vsyncadd [#allocation9], 4294967024  ;;  %vm88_vm0 = vcmask 261120   ;;  %v84_v0 = vld [vmem:[#allocation2] sm:$0xff]  ;;  %v85_v1 = vld [vmem:[#allocation2 + $0x8] sm:$0xff]  ;;  %v437_v15 = vmov 0.0  }
  0x5e   :  { %v89_v2 = vsel %vm88_vm0, %v84_v0, 0.0  ;;  %v92_v3 = vsel %vm88_vm0, %v85_v1, 0.0  ;;  %v278_v14 = vld [vmem:[#allocation8] sm:$0xff]   ;;  %258 = vmatprep.subr.bf16.mxu0 %v437_v15  ;;  %vm438_vm1 = vmmov 0   ;;  %v279_v16 = vld [vmem:[#allocation8 + $0x8] sm:$0xff]   ;;  %vm223_vm6 = vcmask 781312  }
  0x5f   :  { %90 = vadd.xlane.f32.xlu0 %v89_v2  ;;  %262 = vmatprep.mubr.msk.bf16.mxu0 %vm438_vm1, %v437_v15  ;;  %v245_v33 = vld [vmem:[#allocation5] ss:$0 sm:$0xff]  ;;  %v246_v39 = vld [vmem:[#allocation7] ss:$0 sm:$0xff]  ;;  %v247_v44 = vld [vmem:[#allocation10] ss:$0 sm:$0xff] }
  0x60   :  { %259 = vmatpush3.bf16.msra.mxu0 %v278_v14  ;;  %s439_s4 = smov [#allocation11]  }
  0x61   :  { %260 = vmatprep.subr.bf16.mxu0 %v437_v15  ;;  %s231_s6 = sshll.u32 %s439_s4, 4  ;;  %s232_s6 = int_to_ptr.vmem [resolvable:$true] %s231_s6 }
  0x62   :  { %s398_s7 = scalar_lea.vmem %s232_s6, 128  ;;  %p403_p13 = scmp.lt.s32.totalorder %s232_s6, %s232_s6 }
  0x63   :  { %93 = vadd.xlane.f32.xlu0 %v92_v3  ;;  %p399_p12 = scmp.ne.s32.totalorder %s232_s6, %s398_s7  ;;  %p404_p0 = scmp.lt.s32.totalorder %s398_s7, %s398_s7 }
  0x64   :  { %261 = vmatpush3.bf16.msra.mxu0 %v279_v16 }
  0x65   :  { %p405_p1 = por %p404_p0, %p403_p13 }
  0x67   :  { %p406_p2 = pnand %p405_p1, %p399_p12 }
  0xec   :  { %v91_v4 = vpop.xlane.xlu0 %90 }
  0xed   :  { %v96_v5 = vmul.f32 0.03125, %v91_v4 }
  0xef   :  { %v98_v6 = vsub.f32 %v84_v0, %v96_v5 }
  0xf0   :  { %v94_v7 = vpop.xlane.xlu0 %93 }
  0xf1   :  { %v97_v8 = vmul.f32 0.03125, %v94_v7  ;;  %v100_v9 = vmul.f32 %v98_v6, %v98_v6  ;;  %v117_v35 = vmul.f32 %v245_v33, %v98_v6 }
  0xf3   :  { %v99_v10 = vsub.f32 %v85_v1, %v97_v8  ;;  %v102_v11 = vsel %vm88_vm0, %v100_v9, 0.0 }
  0xf4   :  { %103 = vadd.xlane.f32.xlu1 %v102_v11 }
  0xf5   :  { %v101_v12 = vmul.f32 %v99_v10, %v99_v10  ;;  %v118_v36 = vmul.f32 %v245_v33, %v99_v10 }
  0xf7   :  { %v105_v13 = vsel %vm88_vm0, %v101_v12, 0.0 }
  0xf8   :  { %106 = vadd.xlane.f32.xlu1 %v105_v13 }
 0x181   :  { %v104_v17 = vpop.xlane.xlu1 %103 }
 0x182   :  { %v109_v18 = vmul.f32 0.032258064, %v104_v17 }
 0x184   :  { %280 = vrsqrt.f32 %v109_v18  ;;  %vm121_vm2 = vcmp.eq.f32.partialorder %v109_v18, inf  ;;  %v124_v23 = vand.u32 2147483648, %v109_v18  ;;  %vm123_vm3 = vcmp.eq.f32.partialorder %v109_v18, 0.0 }
 0x185   :  { %v107_v19 = vpop.xlane.xlu1 %106 }
 0x186   :  { %v110_v20 = vmul.f32 0.032258064, %v107_v19 }
 0x188   :  { %282 = vrsqrt.f32 %v110_v20  ;;  %vm128_vm4 = vcmp.eq.f32.partialorder %v110_v20, inf  ;;  %v131_v29 = vand.u32 2147483648, %v110_v20  ;;  %vm130_vm5 = vcmp.eq.f32.partialorder %v110_v20, 0.0 }
 0x18e   :  { %v281_v21 = vpop.eup %280 }
 0x18f   :  { %v120_v22 = vmul.f32 %v281_v21, %v109_v18 }
 0x191   :  { %v122_v24 = vsel %vm121_vm2, %v109_v18, %v120_v22 }
 0x192   :  { %v283_v25 = vpop.eup %282  ;;  %v125_v26 = vsel %vm123_vm3, %v124_v23, %v122_v24 }
 0x193   :  { %v133_v27 = vadd.f32 1e-06, %v125_v26  ;;  %v127_v28 = vmul.f32 %v283_v25, %v110_v20 }
 0x195   :  { %284 = vrcp.f32 %v133_v27  ;;  %v129_v30 = vsel %vm128_vm4, %v110_v20, %v127_v28 }
 0x196   :  { %v132_v31 = vsel %vm130_vm5, %v131_v29, %v129_v30 }
 0x197   :  { %v134_v32 = vadd.f32 1e-06, %v132_v31 }
 0x199   :  { %286 = vrcp.f32 %v134_v32 }
 0x19f   :  { %v285_v34 = vpop.eup %284 }
 0x1a0   :  { %v136_v37 = vmul.f32 %v285_v34, %v117_v35 }
 0x1a2   :  { %v145_v41 = vadd.f32 %v246_v39, %v136_v37 }
 0x1a3   :  { %v287_v38 = vpop.eup %286 }
 0x1a4   :  { %v138_v40 = vmul.f32 %v287_v38, %v118_v36 }
 0x1a6   :  { %v146_v42 = vadd.f32 %v246_v39, %v138_v40 }
 0x1a8   :  { %v147_v43 = vpack.c.bf16 %v146_v42, %v145_v41 }
 0x1aa   :  { %263 = vmatmul.mubr.msk.bf16.vlgmr.msra.gmra.mrb[0].mxu0 %vm88_vm0, %v147_v43 }
 0x27d   :  { %v208_v45 = vpop.f32.mrb[0].mxu0 }
 0x27e   :  { %v209_v46 = vadd.f32 %v247_v44, %v208_v45  ;;  %v264_v47 = vpop.f32.mrb[1].mxu0 }
 0x27f   :  { %v211_v48 = vpop.f32.mrb[2].mxu0 }
 0x280   :  { %v253_v49 = vpack.c.bf16 %v209_v46, %v209_v46  ;;  %v212_v50 = vadd.f32 %v247_v44, %v211_v48  ;;  %v265_v51 = vpop.f32.mrb[3].mxu0 }
 0x282   :  { %v254_v52 = vpack.c.bf16 %v212_v50, %v212_v50  ;;  %224 = vst.msk [vmem:[#allocation11] sm:$0xf] %vm223_vm6, %v253_v49 }
 0x284   :  { %225 = vst.msk [vmem:[#allocation11 + $0x4] sm:$0xf] %vm223_vm6, %v254_v52 }
 0x285   :  { %409 = shalt.err (!%p406_p2)
}
 0x286   :  { %s410_s10 = scalar_lea.hbm %s565_s5, 128 }
 0x287   :  { %p411_p3 = scmp.ne.s32.totalorder %s565_s5, %s410_s10  ;;  %p414_p4 = scmp.lt.u32.totalorder %s410_s10, %s565_s5 }
 0x289   :  { %p416_p5 = pnand %p414_p4, %p411_p3 }
 0x28b   :  { %419 = shalt.err (!%p416_p5)
}
 0x28c   :  { %237 = dma.vmem_to_hbm [thread:$0]  %s232_s6, 128, %s565_s5, [#allocation4], %s430_s1, %s430_s1, %s431_s16  }
 0x28d   :  { %426 = dma.done.wait [#allocation4], 128  }
 0x28e   :  { %427 = vsyncadd [#allocation4], 4294967168 }
 0x28f   :  { %241 = vsyncpa [#allocation3], 1 }
 0x290   :  { %242 = vsyncpa [#allocation6], 1 }
 0x291   :  { %243 = vsyncpa [#allocation9], 1 }
 0x292   :  { %244 = vsyncpa [#allocation4], 1 }

// kernel: bert_log_forward.10
= control target key start
LH: loop header
LB: loop body
LE: loop exit
PB: predicated region body
PF: predicated region fallthrough
CT: control target
= control target key end

     0   :  { %s1475_s0 = inlined_call_operand.hbm [shape: s32[2,1,8], index: 0, kind: input, shape index: {}]   ;;  %s1476_s1 = inlined_call_operand.hbm [shape: bf16[2,4,8,8], index: 1, kind: input, shape index: {}]   ;;  %s1477_s2 = inlined_call_operand.hbm [shape: bf16[2,4,8,8], index: 2, kind: input, shape index: {}]   ;;  %s1478_s3 = inlined_call_operand.hbm [shape: bf16[2,4,8,8], index: 3, kind: input, shape index: {}]   ;;  %s1479_s4 = inlined_call_operand.hbm [shape: bf16[2,4,8,8], index: 4, kind: output, shape index: {}]  }
   0x1   :  { %1501 = sst [smem:[#allocation26_spill]] %s1476_s1 }
   0x2   :  { %1502 = sst [smem:[#allocation27_spill]] %s1479_s4 }
   0x3   :  { %9 = vsyncpa [#allocation3], 0 }
   0x4   :  { %11 = vsyncpa [#allocation3 + $0x1], 0 }
   0x5   :  { %12 = vsyncpa [#allocation6], 0 }
   0x6   :  { %14 = vsyncpa [#allocation6 + $0x1], 0 }
   0x7   :  { %15 = vsyncpa [#allocation9], 0 }
   0x8   :  { %17 = vsyncpa [#allocation9 + $0x1], 0 }
   0x9   :  { %18 = vsyncpa [#allocation4], 0 }
   0xa   :  { %20 = vsyncpa [#allocation4 + $0x1], 0  ;;  %s1088_s15 = smov 0   ;;  %s1090_s16 = smov 0  }
   0xb   :  { %s1092_s17 = smov 0   ;;  %s1094_s18 = smov 0  }
   0xc   :  { %s1096_s19 = smov 0   ;;  %s1098_s20 = smov 0  }
   0xd   :  { %s1100_s21 = smov 0   ;;  %s1102_s22 = smov 0  }
   0xe   :  { %s1104_s23 = smov 0   ;;  %s1106_s24 = smov 0  }
   0xf   :  { %s1108_s25 = smov 0  }
  0x10 LB: > { %1503 = sst [smem:[#allocation15_spill]] %s1013_s15  ;;  %s1144_s26 = sadd.s32 4294967295, %s1053_s25   ;;  %s1053_s25 = sphi %s1108_s25, %s26_s25   ;;  %s1049_s24 = sphi %s1106_s24, %s1555_s24   ;;  %s1045_s23 = sphi %s1104_s23, %s1548_s23   ;;  %s1041_s22 = sphi %s1102_s22, %s1547_s22   ;;  %s1037_s21 = sphi %s1100_s21, %s1546_s21   ;;  %s1033_s20 = sphi %s1098_s20, %s1545_s20   ;;  %s1029_s19 = sphi %s1096_s19, %s1554_s19   ;;  %s1025_s18 = sphi %s1094_s18, %s1553_s18   ;;  %s1021_s17 = sphi %s1092_s17, %s1552_s17   ;;  %s1017_s16 = sphi %s1090_s16, %s1551_s16   ;;  %s1013_s15 = sphi %s1088_s15, %s1550_s15  }
  0x11   : > { %1504 = sst [smem:[#allocation16_spill]] %s1033_s20  ;;  %s638_s27 = sadd.s32 4294967294, %s1053_s25  }
  0x12   : > { %1505 = sst [smem:[#allocation17_spill]] %s1045_s23  ;;  %s35_s28 = sadd.s32 1, %s1045_s23 }
  0x13   : > { %1506 = sst [smem:[#allocation18_spill]] %s1049_s24  ;;  %s38_s29 = sadd.s32 1, %s1049_s24 }
  0x14   : > { %1507 = sst [smem:[#allocation19_spill]] %s1053_s25  ;;  %p36_p0 = scmp.ge.s32.totalorder %s35_s28, 4 }
  0x15   : > { %p1489_p1 = scmp.eq.s32.totalorder %s1053_s25, 0  ;;  %p1485_p2 = scmp.eq.s32.totalorder %s1144_s26, 0 }
  0x16   : > { %s73_s30 = sadd.s32 1, %s1021_s17  ;;  %s1557_s28 = smov (%p36_p0, %s35_s28), 0 }
  0x17   : > { %1508 = sst [smem:[#allocation20_spill]] %s1557_s28  ;;  %s1559_s29 = smov (!%p36_p0, %s38_s29), %s1049_s24 }
  0x18   : > { %s69_s5 = ssub.s32 %s1045_s23, %s1557_s28  ;;  %p80_p3 = scmp.ne.s32.totalorder %s1021_s17, %s1017_s16 }
  0x19   : > { %p40_p4 = scmp.ge.s32.totalorder %s1559_s29, 2  ;;  %p86_p5 = scmp.ne.s32.totalorder %s1017_s16, %s1013_s15 }
  0x1a   : > { %p1163_p6 = por %p80_p3, %p1489_p1  ;;  %p168_p7 = scmp.eq.s32.totalorder %s1144_s26, 7 }
  0x1b   : > { %s1561_s29 = smov (%p40_p4, %s1559_s29), 0  ;;  %p1172_p8 = por %p86_p5, %p1485_p2 }
  0x1c   : > { %1510 = sst [smem:[#allocation21_spill]] %s1561_s29  ;;  %p1176_p9 = por %p168_p7, %p80_p3 }
  0x1d   : > { %s1511_s7 = scalar_select %p1172_p8, 1, 0 }
  0x1e   : > { %s1512_s8 = scalar_select %p1176_p9, 1, 0 }
  0x1f   : > { %s1182_s9 = ssub.s32 %s1049_s24, %s1561_s29  ;;  %p174_p10 = scmp.eq.s32.totalorder %s638_s27, 7 }
  0x20   : > { %1513 = sst [smem:[#allocation22_spill]] %s1512_s8  ;;  %s70_s10 = sor.u32 %s69_s5, %s1182_s9 }
  0x21   : > { %p71_p12 = scmp.eq.s32.totalorder %s70_s10, 0  ;;  %p1186_p13 = por %p174_p10, %p86_p5 }
  0x22   : > { %p1488_p0 = scmp.lt.s32.totalorder %s1053_s25, 8  ;;  %s211_s13 = sand.u32 1, %s1053_s25  }
  0x23   : > { %s1514_s11 = scalar_select %p1186_p13, 1, 0 }
  0x24   : > { %s1192_s12 = scalar_select %p71_p12, %s1021_s17, %s73_s30  }
  0x25   : > { %1515 = sst [smem:[#allocation23_spill]] %s1514_s11  ;;  %s1486_s14 = sand.u32 1, %s1021_s17  }
  0x26   : > { %1516 = sst [smem:[#allocation24_spill]] %s1192_s12  ;;  %s1198_s29 = sshll.u32 %s1486_s14, 2 }
  0x27   : > { %s643_s27 = sshll.u32 %s1049_s24, 2  ;;  %s215_s15 = scalar_lea.vmem [#allocation5], %s1198_s29 }
  0x28   : > { %s220_s28 = sadd.s32 %s1045_s23, %s643_s27  ;;  %s224_s5 = sshll.u32 %s215_s15, 4  ;;  %s1205_s5 = int_to_ptr.vmem [resolvable:$true] %s224_s5 }
  0x29   : > { %s1203_s4 = sshll.u32 %s220_s28, 6  ;;  %s1517_s1 = sld [smem:[#allocation26_spill]] }
  0x2a   : > { %p1217_p3 = pnand %p1488_p0, %p1163_p6  ;;  %s1223_s15 = scalar_lea.sflag [#allocation6], %s211_s13 }
  0x2c   : > { %s1518_s27 = scalar_select %p1217_p3, 1, 0 }
  0x2d   : > { %p1229_p10 = pneg %p1217_p3 }
  0x2f   : > { %s1211_s30 = scalar_lea.hbm %s1517_s1, %s1203_s4  ;;  %s808_s14 = scalar_lea.hbm %s1517_s1, 512 }
  0x30   : > { %s803_s28 = scalar_lea.hbm %s1211_s30, 64  ;;  %p809_p6 = scmp.lt.u32.totalorder %s1211_s30, %s1517_s1 }
  0x31   : > { %p804_p7 = scmp.ne.s32.totalorder %s1211_s30, %s803_s28  ;;  %p810_p0 = scmp.lt.u32.totalorder %s808_s14, %s803_s28 }
  0x32   : > { %p812_p11 = scmp.lt.u32.totalorder %s803_s28, %s1211_s30 }
  0x33   : > { %p806_p12 = pnand %p1229_p10, %p804_p7  ;;  %p811_p1 = por %p810_p0, %p809_p6 }
  0x35   : > { %p807_p2 = pneg %p806_p12  ;;  %p813_p4 = por %p812_p11, %p811_p1 }
  0x37   : > { %p814_p5 = pnand %p813_p4, %p807_p2 }
  0x39   : > { %817 = shalt.err (!%p814_p5)
}
  0x3a   : > { %s818_s13 = scalar_lea.vmem %s1205_s5, 64  ;;  %s1055_s6 = smov [#allocation5]  }
  0x3b   : > { %p819_p7 = scmp.ne.s32.totalorder %s1205_s5, %s818_s13  ;;  %s823_s10 = sshll.u32 %s1055_s6, 4  ;;  %s824_s10 = int_to_ptr.vmem [resolvable:$false] %s823_s10 }
  0x3c   : > { %s825_s23 = scalar_lea.vmem %s824_s10, 128  ;;  %p826_p9 = scmp.lt.s32.totalorder %s1205_s5, %s824_s10 }
  0x3d   : > { %p821_p12 = pnand %p819_p7, %p1229_p10  ;;  %p827_p8 = scmp.lt.s32.totalorder %s825_s23, %s818_s13 }
  0x3f   : > { %p822_p13 = pneg %p821_p12  ;;  %p828_p0 = por %p827_p8, %p826_p9 }
  0x41   : > { %p829_p6 = pnand %p828_p0, %p822_p13 }
  0x43   : > { %832 = shalt.err (!%p829_p6)
}
  0x44   : > { %695 = dma.hbm_to_vmem [thread:$0]  (!%p1217_p3), %s1211_s30, 64, %s1205_s5, %s1223_s15  }
  0x45   : > { %p1520_p1 = scmp.lt.s32.totalorder %s1053_s25, 9  ;;  %p1521_p2 = scmp.ge.s32.totalorder %s1053_s25, 1 }
  0x46   : > { %s45_s14 = sadd.s32 1, %s1033_s20  ;;  %p52_p9 = scmp.ne.s32.totalorder %s1033_s20, %s1029_s19 }
  0x47   : > { %p1257_p8 = pnand %p1521_p2, %p1520_p1  ;;  %p1523_p11 = scmp.eq.s32.totalorder %s1182_s9, 0 }
  0x48   : > { %p1525_p13 = scmp.eq.s32.totalorder %s1053_s25, 0  ;;  %p58_p5 = scmp.ne.s32.totalorder %s1029_s19, %s1025_s18 }
  0x49   : > { %s1522_s12 = scalar_select %p1257_p8, 1, 0 }
  0x4a   : > { %s1267_s28 = scalar_select %p1523_p11, %s1033_s20, %s45_s14  }
  0x4b   : > { %p54_p4 = por %p1525_p13, %p52_p9  ;;  %s194_s13 = sand.u32 1, %s1033_s20  }
  0x4c   : > { %1524 = sst [smem:[#allocation25_spill]] %s1267_s28  ;;  %s641_s6 = sshll.u32 %s1049_s24, 4 }
  0x4d   : > { %p1526_p7 = scmp.eq.s32.totalorder %s1144_s26, 0  ;;  %s1284_s23 = scalar_lea.hbm %s1475_s0, %s641_s6 }
  0x4e   : > { %s197_s9 = scalar_lea.vmem [#allocation2], %s194_s13  ;;  %p1528_p0 = scmp.lt.s32.totalorder %s1053_s25, 8 }
  0x4f   : > { %p1277_p12 = por %p1526_p7, %p58_p5  ;;  %s204_s14 = sshll.u32 %s197_s9, 4  ;;  %s1292_s14 = int_to_ptr.vmem [resolvable:$true] %s204_s14 }
  0x50   : > { %p1288_p6 = pnand %p1528_p0, %p54_p4  ;;  %s1298_s6 = scalar_lea.hbm %s1477_s2, %s1203_s4 }
  0x51   : > { %s1527_s10 = scalar_select %p1277_p12, 1, 0 }
  0x52   : > { %s195_s5 = scalar_lea.sflag [#allocation3], %s194_s13  ;;  %s833_s30 = scalar_lea.hbm %s1284_s23, 16 }
  0x53   : > { %p834_p1 = scmp.ne.s32.totalorder %s1284_s23, %s833_s30  ;;  %p835_p2 = pneg %p1288_p6 }
  0x54   : > { %s838_s20 = scalar_lea.hbm %s1475_s0, 32  ;;  %p839_p13 = scmp.lt.u32.totalorder %s1284_s23, %s1475_s0 }
  0x55   : > { %p836_p9 = pnand %p835_p2, %p834_p1  ;;  %p840_p4 = scmp.lt.u32.totalorder %s838_s20, %s833_s30 }
  0x56   : > { %p842_p7 = scmp.lt.u32.totalorder %s833_s30, %s1284_s23 }
  0x57   : > { %p837_p11 = pneg %p836_p9  ;;  %p841_p5 = por %p840_p4, %p839_p13 }
  0x59   : > { %p843_p0 = por %p842_p7, %p841_p5 }
  0x5b   : > { %p844_p12 = pnand %p843_p0, %p837_p11 }
  0x5d   : > { %847 = shalt.err (!%p844_p12)
}
  0x5e   : > { %s848_s1 = scalar_lea.vmem %s1292_s14, 16  ;;  %s1056_s24 = smov [#allocation2]  }
  0x5f   : > { %p849_p1 = scmp.ne.s32.totalorder %s1292_s14, %s848_s1  ;;  %s853_s28 = sshll.u32 %s1056_s24, 4  ;;  %s854_s28 = int_to_ptr.vmem [resolvable:$false] %s853_s28 }
  0x60   : > { %s855_s25 = scalar_lea.vmem %s854_s28, 32  ;;  %p856_p3 = scmp.lt.s32.totalorder %s1292_s14, %s854_s28 }
  0x61   : > { %p851_p9 = pnand %p849_p1, %p835_p2  ;;  %p857_p13 = scmp.lt.s32.totalorder %s855_s25, %s848_s1 }
  0x63   : > { %p852_p8 = pneg %p851_p9  ;;  %p858_p4 = por %p857_p13, %p856_p3 }
  0x65   : > { %p859_p5 = pnand %p858_p4, %p852_p8 }
  0x67   : > { %862 = shalt.err (!%p859_p5)
}
  0x68   : > { %692 = dma.hbm_to_vmem [thread:$0]  (!%p1288_p6), %s1284_s23, 16, %s1292_s14, %s195_s5  }
  0x69   : > { %s235_s20 = scalar_lea.vmem [#allocation7], %s1198_s29  ;;  %s863_s13 = scalar_lea.hbm %s1298_s6, 64 }
  0x6a   : > { %s244_s8 = sshll.u32 %s235_s20, 4  ;;  %p864_p12 = scmp.ne.s32.totalorder %s1298_s6, %s863_s13  ;;  %s245_s8 = int_to_ptr.vmem [resolvable:$true] %s244_s8 }
  0x6b   : > { %s868_s18 = scalar_lea.hbm %s1477_s2, 512  ;;  %p869_p2 = scmp.lt.u32.totalorder %s1298_s6, %s1477_s2 }
  0x6c   : > { %p866_p3 = pnand %p864_p12, %p1229_p10  ;;  %p870_p11 = scmp.lt.u32.totalorder %s868_s18, %s863_s13 }
  0x6d   : > { %p872_p0 = scmp.lt.u32.totalorder %s863_s13, %s1298_s6 }
  0x6e   : > { %p867_p8 = pneg %p866_p3  ;;  %p871_p7 = por %p870_p11, %p869_p2 }
  0x70   : > { %p873_p6 = por %p872_p0, %p871_p7 }
  0x72   : > { %p874_p1 = pnand %p873_p6, %p867_p8 }
  0x74   : > { %877 = shalt.err (!%p874_p1)
}
  0x75   : > { %s878_s23 = scalar_lea.vmem %s245_s8, 64  ;;  %s1057_s14 = smov [#allocation7]  }
  0x76   : > { %p879_p9 = scmp.ne.s32.totalorder %s245_s8, %s878_s23  ;;  %s883_s5 = sshll.u32 %s1057_s14, 4  ;;  %s884_s5 = int_to_ptr.vmem [resolvable:$false] %s883_s5 }
  0x77   : > { %s885_s28 = scalar_lea.vmem %s884_s5, 128  ;;  %p886_p5 = scmp.lt.s32.totalorder %s245_s8, %s884_s5 }
  0x78   : > { %p881_p13 = pnand %p879_p9, %p1229_p10  ;;  %p887_p12 = scmp.lt.s32.totalorder %s885_s28, %s878_s23 }
  0x7a   : > { %p882_p4 = pneg %p881_p13  ;;  %p888_p3 = por %p887_p12, %p886_p5 }
  0x7c   : > { %p889_p2 = pnand %p888_p3, %p882_p4 }
  0x7e   : > { %892 = shalt.err (!%p889_p2)
}
  0x7f   : > { %p1530_p11 = scmp.ne.s32.totalorder %s1518_s27, 0  ;;  %s1348_s13 = scalar_lea.hbm %s1478_s3, %s1203_s4 }
  0x80   : > { %s255_s30 = scalar_lea.vmem [#allocation8], %s1198_s29  ;;  %s1531_s18 = sand.u32 1, %s1021_s17  }
  0x81   : > { %698 = dma.hbm_to_vmem [thread:$0]  (!%p1530_p11), %s1298_s6, 64, %s245_s8, %s1223_s15  }
  0x82   : > { %s264_s9 = sshll.u32 %s255_s30, 4  ;;  %s252_s1 = scalar_lea.sflag [#allocation9], %s1531_s18  ;;  %s265_s9 = int_to_ptr.vmem [resolvable:$true] %s264_s9 }
  0x83   : > { %s893_s24 = scalar_lea.hbm %s1348_s13, 64  ;;  %s898_s8 = scalar_lea.hbm %s1478_s3, 512 }
  0x84   : > { %p894_p8 = scmp.ne.s32.totalorder %s1348_s13, %s893_s24  ;;  %p899_p6 = scmp.lt.u32.totalorder %s1348_s13, %s1478_s3 }
  0x85   : > { %p900_p1 = scmp.lt.u32.totalorder %s898_s8, %s893_s24  ;;  %p902_p13 = scmp.lt.u32.totalorder %s893_s24, %s1348_s13 }
  0x86   : > { %p896_p7 = pnand %p894_p8, %p1229_p10 }
  0x87   : > { %p901_p9 = por %p900_p1, %p899_p6 }
  0x88   : > { %p897_p0 = pneg %p896_p7 }
  0x89   : > { %p903_p4 = por %p902_p13, %p901_p9 }
  0x8b   : > { %p904_p5 = pnand %p903_p4, %p897_p0 }
  0x8d   : > { %907 = shalt.err (!%p904_p5)
}
  0x8e   : > { %s908_s29 = scalar_lea.vmem %s265_s9, 64  ;;  %s1058_s14 = smov [#allocation8]  }
  0x8f   : > { %p909_p12 = scmp.ne.s32.totalorder %s265_s9, %s908_s29  ;;  %s913_s5 = sshll.u32 %s1058_s14, 4  ;;  %s914_s5 = int_to_ptr.vmem [resolvable:$false] %s913_s5 }
  0x90   : > { %s915_s28 = scalar_lea.vmem %s914_s5, 128  ;;  %p916_p8 = scmp.lt.s32.totalorder %s265_s9, %s914_s5 }
  0x91   : > { %p911_p3 = pnand %p909_p12, %p1229_p10  ;;  %p917_p7 = scmp.lt.s32.totalorder %s915_s28, %s908_s29 }
  0x93   : > { %p912_p2 = pneg %p911_p3  ;;  %p918_p11 = por %p917_p7, %p916_p8 }
  0x95   : > { %p919_p1 = pnand %p918_p11, %p912_p2 }
  0x97   : > { %922 = shalt.err (!%p919_p1)
}
  0x98   : > { %p1532_p6 = scmp.ne.s32.totalorder %s1518_s27, 0  ;;  %p1533_p0 = scmp.ne.s32.totalorder %s1522_s12, 0 }
  0x99   : > { %s275_s11 = sand.u32 (!%p1533_p0), 1, %s1029_s19   ;;  %p1534_p10 = scmp.ne.s32.totalorder (!%p1533_p0), %s1527_s10, 0 }
  0x9a   : > { %701 = dma.hbm_to_vmem [thread:$0]  (!%p1532_p6), %s1348_s13, 64, %s265_s9, %s252_s1  }
  0x9b   : > { %273 = sbr.rel (%p1533_p0) target bundleno = 938 (0x3aa), region = 36  ;;  %s276_s25 = scalar_lea.sflag (!%p1533_p0), [#allocation3], %s275_s11 }
  0x9c   : > { %s1373_s20 = scalar_lea.vmem (!%p1533_p0), [#allocation2], %s275_s11 }
  0xa2   : > { %996 = dma.done.wait (%p1534_p10), %s276_s25, 16  }
  0xa3   : > { %998 = vsyncadd (%p1534_p10), %s276_s25, 4294967280  ;;  %s283_s27 = sand.u32 1, %s1144_s26   ;;  %s1381_s30 = sand.u32 1, %s1017_s16  }
  0xa4   : > { %s1384_s12 = sshll.u32 %s1381_s30, 2  ;;  %s284_s13 = scalar_lea.sflag [#allocation6], %s283_s27 }
  0xa5   : > { %s287_s9 = scalar_lea.vmem [#allocation5], %s1384_s12  ;;  %p1535_p11 = scmp.ne.s32.totalorder %s1511_s7, 0 }
  0xa7   : > { %1000 = dma.done.wait (%p1535_p11), %s284_s13, 128  }
  0xa8   : > { %1002 = vsyncadd (%p1535_p11), %s284_s13, 4294967168  ;;  %s296_s10 = scalar_lea.vmem [#allocation7], %s1384_s12  ;;  %s302_s18 = scalar_lea.sflag [#allocation9], %s1381_s30 }
  0xa9   : > { %s305_s26 = scalar_lea.vmem [#allocation8], %s1384_s12 }
  0xaa   : > { %1004 = dma.done.wait (%p1535_p11), %s302_s18, 64  }
  0xab   : > { %1006 = vsyncadd (%p1535_p11), %s302_s18, 4294967232  ;;  %v1059_v0 = vmov 0.0   ;;  %vm1060_vm0 = vmmov 0   ;;  %vm351_vm1 = vcmask 64512   ;;  %v346_v1 = vld [vmem:[%s296_s10] sm:$0xf]  ;;  %v401_v7 = vlaneseq }
  0xac   : > { %667 = vmatprep.subr.bf16.mxu0 %v1059_v0  ;;  %669 = vmatprep.mubr.msk.bf16.mxu0 %vm1060_vm0, %v1059_v0  ;;  %v345_v2 = vld [vmem:[%s287_s9] sm:$0xf]  ;;  %v356_v3 = vsel %vm351_vm1, %v346_v1, 0  ;;  %v398_v8 = vld [vmem:[%s1373_s20] sm:$0x1]  ;;  %v1061_v11 = vmov 0  }
  0xad   : > { %673 = vmatprep.subr.bf16.mxu1 %v1059_v0  ;;  %675 = vmatprep.mubr.msk.bf16.mxu1 %vm1060_vm0, %v1059_v0  ;;  %v348_v4 = vunpack.c.l.bf16 %v345_v2  ;;  %v402_v9 = vshrl.u32 %v401_v7, 7  ;;  %vm399_vm2 = vcmp.gt.s32.totalorder %v398_v8, 0  ;;  %v347_v25 = vld [vmem:[%s305_s26] sm:$0xf]  ;;  %vm422_vm4 = vcmask 1043456   ;;  %s659_s7 = sshll.u32 %s1041_s22, 2 }
  0xae   : > { %668 = vmatpush3.bf16.xpose.msra.mxu0 %v356_v3  ;;  %v400_v12 = vsel %vm399_vm2, 1, %v1061_v11  ;;  %v424_v26 = vsel %vm422_vm4, %v347_v25, 0  ;;  %s481_s1 = sadd.s32 %s1037_s21, %s659_s7  ;;  %s1536_s24 = sld [smem:[#allocation22_spill]]  ;;  %vm467_vm5 = vcmask 60416  }
  0xaf   : > { %v349_v5 = vmul.f32 0.35355338, %v348_v4  ;;  %v403_v10 = vsub.s32 0, %v402_v9  ;;  %674 = vmatpush3.bf16.msra.mxu1 %v424_v26  ;;  %s660_s15 = sshll.u32 %s481_s1, 6  ;;  %s343_s6 = scalar_lea.vmem [#allocation10], %s1384_s12 }
  0xb0   : > { %s485_s8 = sshll.u32 %s343_s6, 4  ;;  %s1537_s29 = sld [smem:[#allocation27_spill]]  ;;  %s1414_s8 = int_to_ptr.vmem [resolvable:$true] %s485_s8 }
  0xb1   : > { %v350_v6 = vpack.c.bf16 %v349_v5, %v349_v5  ;;  %v404_v13 = vrot.slane %v400_v12, %v403_v10  ;;  %s470_s21 = scalar_lea.sflag [#allocation4], %s1381_s30  ;;  %s923_s22 = scalar_lea.vmem %s1414_s8, 64 }
  0xb2   : > { %p924_p9 = scmp.ne.s32.totalorder %s1414_s8, %s923_s22  ;;  %s1062_s5 = smov [#allocation10]  }
  0xb3   : > { %vm405_vm3 = vcmp.eq.s32.totalorder %v404_v13, 1  ;;  %s927_s28 = sshll.u32 %s1062_s5, 4  ;;  %s928_s28 = int_to_ptr.vmem [resolvable:$false] %s927_s28 }
  0xb4   : > { %p1538_p13 = scmp.ne.s32.totalorder %s1536_s24, 0  ;;  %s929_s11 = scalar_lea.vmem %s928_s28, 128 }
  0xb5   : > { %670 = vmatmul.mubr.msk.bf16.vlgmr.msra.gmra.mrb[0].mxu0 %vm351_vm1, %v350_v6  ;;  %p930_p12 = scmp.lt.s32.totalorder %s1414_s8, %s928_s28  ;;  %p931_p3 = scmp.lt.s32.totalorder %s929_s11, %s923_s22 }
  0xb6   : > { %s1412_s14 = scalar_lea.hbm %s1537_s29, %s660_s15  ;;  %p925_p4 = pnand %p924_p9, %p1538_p13 }
  0xb7   : > { %p932_p2 = por %p931_p3, %p930_p12 }
  0xb8   : > { %p926_p5 = pneg %p925_p4 }
  0xba   : > { %p933_p8 = pnand %p932_p2, %p926_p5 }
 0x188   : > { %v392_v14 = vpop.f32.mrb[0].mxu0 }
 0x189   : > { %v406_v15 = vsel %vm405_vm3, %v392_v14, -1e+09  ;;  %v671_v16 = vpop.f32.mrb[1].mxu0 }
 0x18a   : > { %v395_v17 = vpop.f32.mrb[2].mxu0  ;;  %v407_v18 = vsel %vm351_vm1, %v406_v15, -inf }
 0x18b   : > { %408 = vmax.xlane.f32.xlu0 %v407_v18  ;;  %v672_v19 = vpop.f32.mrb[3].mxu0 }
 0x218   : > { %v409_v20 = vpop.xlane.xlu0 %408 }
 0x219   : > { %v410_v21 = vsub.f32 %v406_v15, %v409_v20 }
 0x21b   : > { %v411_v22 = vmul.f32 1.442695, %v410_v21 }
 0x21d   : > { %799 = vpow2.f32 %v411_v22 }
 0x227   : > { %v800_v23 = vpop.eup %799 }
 0x228   : > { %v413_v24 = vsel %vm351_vm1, %v800_v23, 0.0 }
 0x229   : > { %414 = vadd.xlane.f32.xlu0 %v413_v24 }
 0x2b6   : > { %v415_v27 = vpop.xlane.xlu0 %414 }
 0x2b7   : > { %801 = vrcp.f32 %v415_v27 }
 0x2c1   : > { %v802_v28 = vpop.eup %801 }
 0x2c2   : > { %v417_v29 = vmul.f32 %v802_v28, %v800_v23 }
 0x2c4   : > { %v418_v30 = vpack.c.bf16 %v417_v29, %v417_v29 }
 0x2c6   : > { %676 = vmatmul.mubr.msk.bf16.vlgmr.msra.gmra.mrb[0].mxu1 %vm351_vm1, %v418_v30 }
 0x399   : > { %v460_v31 = vpop.f32.mrb[0].mxu1 }
 0x39a   : > { %v466_v32 = vpack.c.bf16 %v460_v31, %v460_v31  ;;  %v677_v33 = vpop.f32.mrb[1].mxu1 }
 0x39b   : > { %v463_v34 = vpop.f32.mrb[2].mxu1 }
 0x39c   : > { %v678_v35 = vpop.f32.mrb[3].mxu1  ;;  %468 = vst.msk [vmem:[%s343_s6] sm:$0xf] %vm467_vm5, %v466_v32 }
 0x39d   : > { %936 = shalt.err (!%p933_p8)
}
 0x39e   : > { %s937_s25 = scalar_lea.hbm %s1412_s14, 64  ;;  %s941_s30 = scalar_lea.hbm %s1537_s29, 512 }
 0x39f   : > { %p938_p7 = scmp.ne.s32.totalorder %s1412_s14, %s937_s25  ;;  %p942_p0 = scmp.lt.u32.totalorder %s1412_s14, %s1537_s29 }
 0x3a0   : > { %p943_p10 = scmp.lt.u32.totalorder %s941_s30, %s937_s25  ;;  %p945_p9 = scmp.lt.u32.totalorder %s937_s25, %s1412_s14 }
 0x3a1   : > { %p939_p1 = pnand %p938_p7, %p1538_p13 }
 0x3a2   : > { %p944_p11 = por %p943_p10, %p942_p0 }
 0x3a3   : > { %p940_p6 = pneg %p939_p1 }
 0x3a4   : > { %p946_p4 = por %p945_p9, %p944_p11 }
 0x3a6   : > { %p947_p5 = pnand %p946_p4, %p940_p6 }
 0x3a8   : > { %950 = shalt.err (!%p947_p5)
}
 0x3a9   : > { %687 = dma.vmem_to_hbm [thread:$0]  (%p1538_p13), %s1414_s8, 64, %s1412_s14, %s470_s21  }
 0x3aa PF: > { %s1539_s9 = sld [smem:[#allocation19_spill]]  ;;  %s1540_s10 = sld [smem:[#allocation15_spill]] }
 0x3ab   : > { %s1541_s18 = sld [smem:[#allocation23_spill]] }
 0x3b0   : > { %p707_p12 = scmp.ge.s32.totalorder %s1539_s9, 2  ;;  %s497_s26 = sand.u32 1, %s1540_s10  }
 0x3b1   : > { %p1542_p3 = scmp.ne.s32.totalorder %s1541_s18, 0  ;;  %s498_s7 = scalar_lea.sflag [#allocation4], %s497_s26 }
 0x3b3   : > { %p703_p2 = pnand %p707_p12, %p1542_p3 }
 0x3b5   : > { %1008 = dma.done.wait (!%p703_p2), %s498_s7, 64  }
 0x3b6   : > { %1010 = vsyncadd (!%p703_p2), %s498_s7, 4294967232  ;;  %s26_s25 = sadd.s32 1, %s1539_s9   ;;  %s1543_s1 = sld [smem:[#allocation24_spill]] }
 0x3b7   : > { %p23_p8 = scmp.ge.s32.totalorder %s26_s25, 10   ;;  %s1544_s24 = sld [smem:[#allocation16_spill]] }
 0x3b8   : > { %s1545_s20 = sld [smem:[#allocation25_spill]]  ;;  %s1546_s21 = sld [smem:[#allocation17_spill]] }
 0x3b9   : > { %s1547_s22 = sld [smem:[#allocation18_spill]]  ;;  %s1548_s23 = sld [smem:[#allocation20_spill]] }
 0x3ba   : > { %s1549_s6 = sld [smem:[#allocation21_spill]]  ;;  %s1550_s15 = smov %s1017_s16 }
 0x3bb   : > { %s1551_s16 = smov %s1021_s17  ;;  %s1553_s18 = smov %s1029_s19 }
 0x3bc   : > { %s1552_s17 = smov %s1543_s1  ;;  %25 = sbr.rel (!%p23_p8) target bundleno = 16 (0x10), region = 118 }
 0x3bd   : > { %s1554_s19 = smov %s1544_s24 }
 0x3c0   : > { %s1555_s24 = smov %s1549_s6 }
 0x3c3   :  { %503 = vsyncpa [#allocation3], 1 }
 0x3c4   :  { %505 = vsyncpa [#allocation3 + $0x1], 1 }
 0x3c5   :  { %506 = vsyncpa [#allocation6], 1 }
 0x3c6   :  { %508 = vsyncpa [#allocation6 + $0x1], 1 }
 0x3c7   :  { %509 = vsyncpa [#allocation9], 1 }
 0x3c8   :  { %511 = vsyncpa [#allocation9 + $0x1], 1 }
 0x3c9   :  { %512 = vsyncpa [#allocation4], 1 }
 0x3ca   :  { %514 = vsyncpa [#allocation4 + $0x1], 1 }

// kernel: bert_log_forward.12
= control target key start
LH: loop header
LB: loop body
LE: loop exit
PB: predicated region body
PF: predicated region fallthrough
CT: control target
= control target key end

     0   :  { %12 = vsyncpa [#allocation3], 0  ;;  %s877_s0 = inlined_call_operand.hbm [shape: f32[16,32], index: 0, kind: input, shape index: {}]   ;;  %s878_s1 = inlined_call_operand.hbm [shape: f32[1,32], index: 1, kind: input, shape index: {}]   ;;  %s879_s2 = inlined_call_operand.hbm [shape: f32[1,32], index: 2, kind: input, shape index: {}, may-alias: {2,6}]   ;;  %s880_s3 = inlined_call_operand.hbm [shape: bf16[32,128], index: 3, kind: input, shape index: {}]   ;;  %s881_s4 = inlined_call_operand.hbm [shape: f32[1,128], index: 4, kind: input, shape index: {}]   ;;  %s882_s5 = inlined_call_operand.hbm [shape: bf16[128,32], index: 5, kind: input, shape index: {}]   ;;  %s883_s6 = inlined_call_operand.hbm [shape: f32[1,32], index: 6, kind: input, shape index: {}, may-alias: {2,6}]   ;;  %s884_s7 = inlined_call_operand.hbm [shape: f32[16,32], index: 7, kind: output, shape index: {}]  }
   0x1   :  { %13 = vsyncpa [#allocation6], 0 }
   0x2   :  { %14 = vsyncpa [#allocation9], 0 }
   0x3   :  { %15 = vsyncpa [#allocation12], 0 }
   0x4   :  { %16 = vsyncpa [#allocation4], 0  ;;  %s678_s24 = smov [#allocation5]   ;;  %s679_s26 = smov [#allocation8]  }
   0x5   :  { %s35_s25 = sshll.u32 %s678_s24, 4  ;;  %s54_s27 = sshll.u32 %s679_s26, 4  ;;  %s36_s25 = int_to_ptr.vmem [resolvable:$true] %s35_s25  ;;  %s732_s27 = int_to_ptr.vmem [resolvable:$true] %s54_s27 }
   0x6   :  { %s492_s30 = scalar_lea.hbm %s878_s1, 16 }
   0x7   :  { %p493_p0 = scmp.ne.s32.totalorder %s878_s1, %s492_s30  ;;  %p496_p1 = scmp.lt.u32.totalorder %s492_s30, %s878_s1 }
   0x9   :  { %p498_p2 = pnand %p496_p1, %p493_p0 }
   0xb   :  { %501 = shalt.err (!%p498_p2)
}
   0xc   :  { %s502_s12 = scalar_lea.vmem %s36_s25, 16  ;;  %s506_s13 = scalar_lea.vmem %s36_s25, 32 }
   0xd   :  { %p503_p3 = scmp.ne.s32.totalorder %s36_s25, %s502_s12  ;;  %p507_p4 = scmp.lt.s32.totalorder %s36_s25, %s36_s25 }
   0xe   :  { %p508_p5 = scmp.lt.s32.totalorder %s506_s13, %s502_s12 }
  0x10   :  { %p509_p6 = por %p508_p5, %p507_p4 }
  0x12   :  { %p510_p7 = pnand %p509_p6, %p503_p3 }
  0x14   :  { %513 = shalt.err (!%p510_p7)
}
  0x15   :  { %38 = dma.hbm_to_vmem [thread:$0]  %s878_s1, 16, %s36_s25, [#allocation6]  }
  0x16   :  { %s514_s18 = scalar_lea.hbm %s880_s3, 256 }
  0x17   :  { %p515_p8 = scmp.ne.s32.totalorder %s880_s3, %s514_s18  ;;  %p518_p9 = scmp.lt.u32.totalorder %s514_s18, %s880_s3 }
  0x19   :  { %p520_p10 = pnand %p518_p9, %p515_p8 }
  0x1b   :  { %523 = shalt.err (!%p520_p10)
}
  0x1c   :  { %s524_s23 = scalar_lea.vmem %s732_s27, 256  ;;  %p529_p12 = scmp.lt.s32.totalorder %s732_s27, %s732_s27 }
  0x1d   :  { %p525_p11 = scmp.ne.s32.totalorder %s732_s27, %s524_s23  ;;  %p530_p13 = scmp.lt.s32.totalorder %s524_s23, %s524_s23 }
  0x1f   :  { %p531_p0 = por %p530_p13, %p529_p12 }
  0x21   :  { %p532_p1 = pnand %p531_p0, %p525_p11 }
  0x23   :  { %535 = shalt.err (!%p532_p1)
}
  0x24   :  { %s680_s1 = smov 64   ;;  %s681_s24 = smov 4  }
  0x25   :  { %60 = dma.hbm_to_vmem [thread:$0]  %s880_s3, 256, %s732_s27, [#allocation9], %s680_s1, %s680_s1, %s681_s24  }
  0x26   :  { %s682_s28 = smov [#allocation11]   ;;  %s683_s30 = smov [#allocation2]  }
  0x27   :  { %s76_s29 = sshll.u32 %s682_s28, 4  ;;  %s22_s8 = sshll.u32 %s683_s30, 4  ;;  %s77_s29 = int_to_ptr.vmem [resolvable:$true] %s76_s29  ;;  %s763_s8 = int_to_ptr.vmem [resolvable:$true] %s22_s8 }
  0x28   :  { %s536_s11 = scalar_lea.hbm %s882_s5, 1024 }
  0x29   :  { %p537_p2 = scmp.ne.s32.totalorder %s882_s5, %s536_s11  ;;  %p540_p3 = scmp.lt.u32.totalorder %s536_s11, %s882_s5 }
  0x2b   :  { %p542_p4 = pnand %p540_p3, %p537_p2 }
  0x2d   :  { %545 = shalt.err (!%p542_p4)
}
  0x2e   :  { %s546_s3 = scalar_lea.vmem %s77_s29, 1024  ;;  %p551_p6 = scmp.lt.s32.totalorder %s77_s29, %s77_s29 }
  0x2f   :  { %p547_p5 = scmp.ne.s32.totalorder %s77_s29, %s546_s3  ;;  %p552_p7 = scmp.lt.s32.totalorder %s546_s3, %s546_s3 }
  0x31   :  { %p553_p8 = por %p552_p7, %p551_p6 }
  0x33   :  { %p554_p9 = pnand %p553_p8, %p547_p5 }
  0x35   :  { %557 = shalt.err (!%p554_p9)
}
  0x36   :  { %82 = dma.hbm_to_vmem [thread:$0]  %s882_s5, 1024, %s77_s29, [#allocation12], %s680_s1, %s680_s1, %s681_s24  }
  0x37   :  { %s558_s19 = scalar_lea.hbm %s877_s0, 256 }
  0x38   :  { %p559_p10 = scmp.ne.s32.totalorder %s877_s0, %s558_s19  ;;  %p562_p11 = scmp.lt.u32.totalorder %s558_s19, %s877_s0 }
  0x3a   :  { %p564_p12 = pnand %p562_p11, %p559_p10 }
  0x3c   :  { %567 = shalt.err (!%p564_p12)
}
  0x3d   :  { %s568_s25 = scalar_lea.vmem %s763_s8, 256  ;;  %p573_p0 = scmp.lt.s32.totalorder %s763_s8, %s763_s8 }
  0x3e   :  { %p569_p13 = scmp.ne.s32.totalorder %s763_s8, %s568_s25  ;;  %p574_p1 = scmp.lt.s32.totalorder %s568_s25, %s568_s25 }
  0x40   :  { %p575_p2 = por %p574_p1, %p573_p0 }
  0x42   :  { %p576_p3 = pnand %p575_p2, %p569_p13 }
  0x44   :  { %579 = shalt.err (!%p576_p3)
}
  0x45   :  { %s684_s5 = smov 128   ;;  %s685_s1 = smov 8  }
  0x46   :  { %28 = dma.hbm_to_vmem [thread:$0]  %s877_s0, 256, %s763_s8, [#allocation3], %s684_s5, %s684_s5, %s685_s1  }
  0x47   :  { %s686_s28 = smov [#allocation7]   ;;  %s687_s30 = smov [#allocation10]  }
  0x48   :  { %s45_s29 = sshll.u32 %s686_s28, 4  ;;  %s67_s9 = sshll.u32 %s687_s30, 4  ;;  %s46_s29 = int_to_ptr.vmem [resolvable:$true] %s45_s29  ;;  %s68_s9 = int_to_ptr.vmem [resolvable:$true] %s67_s9 }
  0x49   :  { %s580_s12 = scalar_lea.hbm %s879_s2, 16 }
  0x4a   :  { %p581_p4 = scmp.ne.s32.totalorder %s879_s2, %s580_s12  ;;  %p584_p5 = scmp.lt.u32.totalorder %s580_s12, %s879_s2 }
  0x4c   :  { %p586_p6 = pnand %p584_p5, %p581_p4 }
  0x4e   :  { %589 = shalt.err (!%p586_p6)
}
  0x4f   :  { %s590_s0 = scalar_lea.vmem %s46_s29, 16  ;;  %s594_s8 = scalar_lea.vmem %s46_s29, 32 }
  0x50   :  { %p591_p7 = scmp.ne.s32.totalorder %s46_s29, %s590_s0  ;;  %p595_p8 = scmp.lt.s32.totalorder %s46_s29, %s46_s29 }
  0x51   :  { %p596_p9 = scmp.lt.s32.totalorder %s594_s8, %s590_s0 }
  0x53   :  { %p597_p10 = por %p596_p9, %p595_p8 }
  0x55   :  { %p598_p11 = pnand %p597_p10, %p591_p7 }
  0x57   :  { %601 = shalt.err (!%p598_p11)
}
  0x58   :  { %48 = dma.hbm_to_vmem [thread:$0]  %s879_s2, 16, %s46_s29, [#allocation6]  }
  0x59   :  { %s602_s19 = scalar_lea.hbm %s881_s4, 16 }
  0x5a   :  { %p603_p12 = scmp.ne.s32.totalorder %s881_s4, %s602_s19  ;;  %p606_p13 = scmp.lt.u32.totalorder %s602_s19, %s881_s4 }
  0x5c   :  { %p608_p0 = pnand %p606_p13, %p603_p12 }
  0x5e   :  { %611 = shalt.err (!%p608_p0)
}
  0x5f   :  { %s612_s25 = scalar_lea.vmem %s68_s9, 16  ;;  %s616_s24 = scalar_lea.vmem %s68_s9, 32 }
  0x60   :  { %p613_p1 = scmp.ne.s32.totalorder %s68_s9, %s612_s25  ;;  %p617_p2 = scmp.lt.s32.totalorder %s68_s9, %s68_s9 }
  0x61   :  { %p618_p3 = scmp.lt.s32.totalorder %s616_s24, %s612_s25 }
  0x63   :  { %p619_p4 = por %p618_p3, %p617_p2 }
  0x65   :  { %p620_p5 = pnand %p619_p4, %p613_p1 }
  0x67   :  { %623 = shalt.err (!%p620_p5)
}
  0x68   :  { %70 = dma.hbm_to_vmem [thread:$0]  %s881_s4, 16, %s68_s9, [#allocation9]  }
  0x69   :  { %s688_s28 = smov [#allocation13]   ;;  %s624_s11 = scalar_lea.hbm %s883_s6, 16 }
  0x6a   :  { %s89_s29 = sshll.u32 %s688_s28, 4  ;;  %p625_p6 = scmp.ne.s32.totalorder %s883_s6, %s624_s11  ;;  %s90_s29 = int_to_ptr.vmem [resolvable:$true] %s89_s29 }
  0x6b   :  { %p628_p7 = scmp.lt.u32.totalorder %s624_s11, %s883_s6 }
  0x6d   :  { %p630_p8 = pnand %p628_p7, %p625_p6 }
  0x6f   :  { %633 = shalt.err (!%p630_p8)
}
  0x70   :  { %s634_s3 = scalar_lea.vmem %s90_s29, 16  ;;  %s638_s4 = scalar_lea.vmem %s90_s29, 32 }
  0x71   :  { %p635_p9 = scmp.ne.s32.totalorder %s90_s29, %s634_s3  ;;  %p639_p10 = scmp.lt.s32.totalorder %s90_s29, %s90_s29 }
  0x72   :  { %p640_p11 = scmp.lt.s32.totalorder %s638_s4, %s634_s3 }
  0x74   :  { %p641_p12 = por %p640_p11, %p639_p10 }
  0x76   :  { %p642_p13 = pnand %p641_p12, %p635_p9 }
  0x78   :  { %645 = shalt.err (!%p642_p13)
}
  0x79   :  { %92 = dma.hbm_to_vmem [thread:$0]  %s883_s6, 16, %s90_s29, [#allocation12]  }
  0x7a   :  { %668 = dma.done.wait [#allocation3], 256  }
  0x7b   :  { %669 = vsyncadd [#allocation3], 4294967040 }
  0x7c   :  { %670 = dma.done.wait [#allocation6], 32  }
  0x7d   :  { %671 = vsyncadd [#allocation6], 4294967264 }
  0x7e   :  { %672 = dma.done.wait [#allocation9], 272  }
  0x7f   :  { %673 = vsyncadd [#allocation9], 4294967024 }
  0x80   :  { %674 = dma.done.wait [#allocation12], 1040  }
  0x81   :  { %675 = vsyncadd [#allocation12], 4294966256  ;;  %vm119_vm0 = vcmask 261120   ;;  %v833_v0 = vld [vmem:[#allocation2] sm:$0xff]  ;;  %v835_v1 = vld [vmem:[#allocation2 + $0x8] sm:$0xff]  ;;  %v689_v15 = vmov 0.0  }
  0x82   :  { %v120_v2 = vsel %vm119_vm0, %v833_v0, 0.0  ;;  %v123_v3 = vsel %vm119_vm0, %v835_v1, 0.0  ;;  %v470_v14 = vld [vmem:[#allocation8] sm:$0xff]   ;;  %428 = vmatprep.subr.bf16.mxu0 %v689_v15  ;;  %vm690_vm1 = vmmov 0   ;;  %v471_v16 = vld [vmem:[#allocation8 + $0x8] sm:$0xff]   ;;  %436 = vmatprep.subr.bf16.mxu1 %v689_v15  ;;  %v472_v44 = vld [vmem:[#allocation11] sm:$0xff]  }
  0x83   :  { %121 = vadd.xlane.f32.xlu0 %v120_v2  ;;  %432 = vmatprep.mubr.msk.bf16.mxu0 %vm690_vm1, %v689_v15  ;;  %v401_v33 = vld [vmem:[#allocation5] ss:$0 sm:$0xff]  ;;  %v402_v39 = vld [vmem:[#allocation7] ss:$0 sm:$0xff]  ;;  %v474_v46 = vld [vmem:[#allocation11 + $0x10] sm:$0xff]   ;;  %s691_s6 = smov [#allocation14]  }
  0x84   :  { %429 = vmatpush3.bf16.msra.mxu0 %v470_v14  ;;  %452 = vmatprep.mubr.msk.bf16.mxu1 %vm690_vm1, %v689_v15  ;;  %v473_v45 = vld [vmem:[#allocation11 + $0x8] sm:$0xff]   ;;  %v475_v47 = vld [vmem:[#allocation11 + $0x18] sm:$0xff]   ;;  %v476_v48 = vld [vmem:[#allocation11 + $0x20] sm:$0xff]   ;;  %s386_s8 = sshll.u32 %s691_s6, 4  ;;  %s387_s8 = int_to_ptr.vmem [resolvable:$true] %s386_s8 }
  0x85   :  { %430 = vmatprep.subr.bf16.mxu0 %v689_v15  ;;  %437 = vmatpush3.bf16.msra.mxu1 %v472_v44  ;;  %v477_v49 = vld [vmem:[#allocation11 + $0x28] sm:$0xff]   ;;  %v478_v50 = vld [vmem:[#allocation11 + $0x30] sm:$0xff]   ;;  %v479_v51 = vld [vmem:[#allocation11 + $0x38] sm:$0xff]   ;;  %s646_s27 = scalar_lea.vmem %s387_s8, 256  ;;  %p651_p1 = scmp.lt.s32.totalorder %s387_s8, %s387_s8 }
  0x86   :  { %438 = vmatprep.subr.bf16.mxu1 %v689_v15  ;;  %v403_v52 = vld [vmem:[#allocation10] ss:$0 sm:$0xff]  ;;  %p647_p0 = scmp.ne.s32.totalorder %s387_s8, %s646_s27  ;;  %p652_p2 = scmp.lt.s32.totalorder %s646_s27, %s646_s27 }
  0x87   :  { %124 = vadd.xlane.f32.xlu0 %v123_v3 }
  0x88   :  { %431 = vmatpush3.bf16.msra.mxu0 %v471_v16  ;;  %v407_v16 = vld [vmem:[#allocation13] ss:$0 sm:$0xff]  ;;  %p653_p3 = por %p652_p2, %p651_p1 }
  0x89   :  { %439 = vmatpush3.bf16.msra.mxu1 %v473_v45 }
  0x8a   :  { %440 = vmatprep.subr.bf16.mxu1 %v689_v15  ;;  %p654_p4 = pnand %p653_p3, %p647_p0 }
  0x8d   :  { %441 = vmatpush3.bf16.msra.mxu1 %v474_v46 }
  0x8e   :  { %442 = vmatprep.subr.bf16.mxu1 %v689_v15 }
  0x91   :  { %443 = vmatpush3.bf16.msra.mxu1 %v475_v47 }
  0x92   :  { %444 = vmatprep.subr.bf16.mxu1 %v689_v15 }
  0x95   :  { %445 = vmatpush3.bf16.msra.mxu1 %v476_v48 }
  0x96   :  { %446 = vmatprep.subr.bf16.mxu1 %v689_v15 }
  0x99   :  { %447 = vmatpush3.bf16.msra.mxu1 %v477_v49 }
  0x9a   :  { %448 = vmatprep.subr.bf16.mxu1 %v689_v15 }
  0x9d   :  { %449 = vmatpush3.bf16.msra.mxu1 %v478_v50 }
  0x9e   :  { %450 = vmatprep.subr.bf16.mxu1 %v689_v15 }
  0xa1   :  { %451 = vmatpush3.bf16.msra.mxu1 %v479_v51 }
 0x110   :  { %v122_v4 = vpop.xlane.xlu0 %121 }
 0x111   :  { %v127_v5 = vmul.f32 0.03125, %v122_v4 }
 0x113   :  { %v129_v6 = vsub.f32 %v833_v0, %v127_v5 }
 0x114   :  { %v125_v7 = vpop.xlane.xlu0 %124 }
 0x115   :  { %v128_v8 = vmul.f32 0.03125, %v125_v7  ;;  %v131_v9 = vmul.f32 %v129_v6, %v129_v6  ;;  %v148_v35 = vmul.f32 %v401_v33, %v129_v6 }
 0x117   :  { %v130_v10 = vsub.f32 %v835_v1, %v128_v8  ;;  %v133_v11 = vsel %vm119_vm0, %v131_v9, 0.0 }
 0x118   :  { %134 = vadd.xlane.f32.xlu1 %v133_v11 }
 0x119   :  { %v132_v12 = vmul.f32 %v130_v10, %v130_v10  ;;  %v149_v36 = vmul.f32 %v401_v33, %v130_v10 }
 0x11b   :  { %v136_v13 = vsel %vm119_vm0, %v132_v12, 0.0 }
 0x11c   :  { %137 = vadd.xlane.f32.xlu1 %v136_v13 }
 0x1a5   :  { %v135_v17 = vpop.xlane.xlu1 %134 }
 0x1a6   :  { %v140_v18 = vmul.f32 0.032258064, %v135_v17 }
 0x1a8   :  { %480 = vrsqrt.f32 %v140_v18  ;;  %vm152_vm2 = vcmp.eq.f32.partialorder %v140_v18, inf  ;;  %v155_v23 = vand.u32 2147483648, %v140_v18  ;;  %vm154_vm3 = vcmp.eq.f32.partialorder %v140_v18, 0.0 }
 0x1a9   :  { %v138_v19 = vpop.xlane.xlu1 %137 }
 0x1aa   :  { %v141_v20 = vmul.f32 0.032258064, %v138_v19 }
 0x1ac   :  { %482 = vrsqrt.f32 %v141_v20  ;;  %vm159_vm4 = vcmp.eq.f32.partialorder %v141_v20, inf  ;;  %v162_v29 = vand.u32 2147483648, %v141_v20  ;;  %vm161_vm5 = vcmp.eq.f32.partialorder %v141_v20, 0.0 }
 0x1b2   :  { %v481_v21 = vpop.eup %480 }
 0x1b3   :  { %v151_v22 = vmul.f32 %v481_v21, %v140_v18 }
 0x1b5   :  { %v153_v24 = vsel %vm152_vm2, %v140_v18, %v151_v22 }
 0x1b6   :  { %v483_v25 = vpop.eup %482  ;;  %v156_v26 = vsel %vm154_vm3, %v155_v23, %v153_v24 }
 0x1b7   :  { %v164_v27 = vadd.f32 1e-06, %v156_v26  ;;  %v158_v28 = vmul.f32 %v483_v25, %v141_v20 }
 0x1b9   :  { %484 = vrcp.f32 %v164_v27  ;;  %v160_v30 = vsel %vm159_vm4, %v141_v20, %v158_v28 }
 0x1ba   :  { %v163_v31 = vsel %vm161_vm5, %v162_v29, %v160_v30 }
 0x1bb   :  { %v165_v32 = vadd.f32 1e-06, %v163_v31 }
 0x1bd   :  { %486 = vrcp.f32 %v165_v32 }
 0x1c3   :  { %v485_v34 = vpop.eup %484 }
 0x1c4   :  { %v167_v37 = vmul.f32 %v485_v34, %v148_v35 }
 0x1c6   :  { %v176_v41 = vadd.f32 %v402_v39, %v167_v37 }
 0x1c7   :  { %v487_v38 = vpop.eup %486 }
 0x1c8   :  { %v169_v40 = vmul.f32 %v487_v38, %v149_v36 }
 0x1ca   :  { %v177_v42 = vadd.f32 %v402_v39, %v169_v40 }
 0x1cc   :  { %v178_v43 = vpack.c.bf16 %v177_v42, %v176_v41 }
 0x1ce   :  { %433 = vmatmul.mubr.msk.bf16.vlgmr.msra.gmra.mrb[0].mxu0 %vm119_vm0, %v178_v43 }
 0x2a1   :  { %v239_v53 = vpop.f32.mrb[0].mxu0 }
 0x2a2   :  { %v240_v54 = vadd.f32 %v403_v52, %v239_v53  ;;  %v434_v55 = vpop.f32.mrb[1].mxu0 }
 0x2a3   :  { %v242_v56 = vpop.f32.mrb[2].mxu0 }
 0x2a4   :  { %v248_v57 = vmul.f32 0.044715, %v240_v54  ;;  %v243_v58 = vadd.f32 %v403_v52, %v242_v56  ;;  %v435_v59 = vpop.f32.mrb[3].mxu0  ;;  %v246_v10 = vmul.f32 0.5, %v240_v54 }
 0x2a6   :  { %v250_v60 = vmul.f32 %v248_v57, %v240_v54  ;;  %v249_v61 = vmul.f32 0.044715, %v243_v58  ;;  %v247_v11 = vmul.f32 0.5, %v243_v58 }
 0x2a8   :  { %v252_v62 = vmul.f32 %v250_v60, %v240_v54  ;;  %v251_v63 = vmul.f32 %v249_v61, %v243_v58 }
 0x2aa   :  { %v253_v2 = vmul.f32 %v251_v63, %v243_v58  ;;  %v254_v3 = vadd.f32 %v252_v62, %v240_v54 }
 0x2ac   :  { %v255_v4 = vadd.f32 %v253_v2, %v243_v58  ;;  %v256_v5 = vmul.f32 0.7978846, %v254_v3 }
 0x2ae   :  { %v257_v6 = vmul.f32 0.7978846, %v255_v4  ;;  %488 = vtanh.f32 %v256_v5 }
 0x2b0   :  { %490 = vtanh.f32 %v257_v6 }
 0x2b8   :  { %v489_v7 = vpop.eup %488 }
 0x2b9   :  { %v260_v8 = vadd.f32 1.0, %v489_v7 }
 0x2ba   :  { %v491_v9 = vpop.eup %490 }
 0x2bb   :  { %v261_v12 = vadd.f32 1.0, %v491_v9  ;;  %v262_v13 = vmul.f32 %v260_v8, %v246_v10 }
 0x2bd   :  { %v263_v14 = vmul.f32 %v261_v12, %v247_v11 }
 0x2bf   :  { %v264_v15 = vpack.c.bf16 %v263_v14, %v262_v13 }
 0x2c1   :  { %453 = vmatmul.mubr.bf16.vlgmr.msra.gmra.mrb[0].mxu1 %v264_v15 }
 0x394   :  { %v370_v17 = vpop.f32.mrb[0].mxu1 }
 0x395   :  { %v371_v18 = vadd.f32 %v407_v16, %v370_v17  ;;  %v454_v19 = vpop.f32.mrb[1].mxu1 }
 0x396   :  { %v373_v20 = vpop.f32.mrb[2].mxu1 }
 0x397   :  { %v377_v21 = vadd.f32 %v371_v18, %v833_v0  ;;  %v374_v22 = vadd.f32 %v407_v16, %v373_v20  ;;  %v455_v23 = vpop.f32.mrb[3].mxu1 }
 0x399   :  { %379 = vst.msk [vmem:[#allocation14] sm:$0xff] %vm119_vm0, %v377_v21  ;;  %v378_v24 = vadd.f32 %v374_v22, %v835_v1 }
 0x39b   :  { %380 = vst.msk [vmem:[#allocation14 + $0x8] sm:$0xff] %vm119_vm0, %v378_v24 }
 0x39c   :  { %657 = shalt.err (!%p654_p4)
}
 0x39d   :  { %s658_s18 = scalar_lea.hbm %s884_s7, 256 }
 0x39e   :  { %p659_p5 = scmp.ne.s32.totalorder %s884_s7, %s658_s18  ;;  %p662_p6 = scmp.lt.u32.totalorder %s658_s18, %s884_s7 }
 0x3a0   :  { %p664_p7 = pnand %p662_p6, %p659_p5 }
 0x3a2   :  { %667 = shalt.err (!%p664_p7)
}
 0x3a3   :  { %392 = dma.vmem_to_hbm [thread:$0]  %s387_s8, 256, %s884_s7, [#allocation4], %s684_s5, %s684_s5, %s685_s1  }
 0x3a4   :  { %676 = dma.done.wait [#allocation4], 256  }
 0x3a5   :  { %677 = vsyncadd [#allocation4], 4294967040 }
 0x3a6   :  { %396 = vsyncpa [#allocation3], 1 }
 0x3a7   :  { %397 = vsyncpa [#allocation6], 1 }
 0x3a8   :  { %398 = vsyncpa [#allocation9], 1 }
 0x3a9   :  { %399 = vsyncpa [#allocation12], 1 }
 0x3aa   :  { %400 = vsyncpa [#allocation4], 1 }

// kernel: bert_log_forward.17
= control target key start
LH: loop header
LB: loop body
LE: loop exit
PB: predicated region body
PF: predicated region fallthrough
CT: control target
= control target key end

     0   :  { %8 = vsyncpa [#allocation3], 0  ;;  %s379_s0 = inlined_call_operand.hbm [shape: f32[16,32], index: 0, kind: input, shape index: {}]   ;;  %s380_s1 = inlined_call_operand.hbm [shape: bf16[32,128], index: 1, kind: input, shape index: {}]   ;;  %s381_s2 = inlined_call_operand.hbm [shape: f32[1,128], index: 2, kind: input, shape index: {}]   ;;  %s382_s3 = inlined_call_operand.hbm [shape: f32[16,128], index: 3, kind: output, shape index: {}]  }
   0x1   :  { %9 = vsyncpa [#allocation6], 0 }
   0x2   :  { %10 = vsyncpa [#allocation4], 0  ;;  %s295_s12 = smov [#allocation5]   ;;  %s201_s16 = scalar_lea.hbm %s380_s1, 256 }
   0x3   :  { %s28_s13 = sshll.u32 %s295_s12, 4  ;;  %p202_p0 = scmp.ne.s32.totalorder %s380_s1, %s201_s16  ;;  %s29_s13 = int_to_ptr.vmem [resolvable:$true] %s28_s13 }
   0x4   :  { %p205_p1 = scmp.lt.u32.totalorder %s201_s16, %s380_s1 }
   0x6   :  { %p207_p2 = pnand %p205_p1, %p202_p0 }
   0x8   :  { %210 = shalt.err (!%p207_p2)
}
   0x9   :  { %s211_s21 = scalar_lea.vmem %s29_s13, 256  ;;  %p216_p4 = scmp.lt.s32.totalorder %s29_s13, %s29_s13 }
   0xa   :  { %p212_p3 = scmp.ne.s32.totalorder %s29_s13, %s211_s21  ;;  %p217_p5 = scmp.lt.s32.totalorder %s211_s21, %s211_s21 }
   0xc   :  { %p218_p6 = por %p217_p5, %p216_p4 }
   0xe   :  { %p219_p7 = pnand %p218_p6, %p212_p3 }
  0x10   :  { %222 = shalt.err (!%p219_p7)
}
  0x11   :  { %s296_s22 = smov 64   ;;  %s297_s23 = smov 4  }
  0x12   :  { %34 = dma.hbm_to_vmem [thread:$0]  %s380_s1, 256, %s29_s13, [#allocation6], %s296_s22, %s296_s22, %s297_s23  }
  0x13   :  { %s298_s26 = smov [#allocation2]   ;;  %s223_s30 = scalar_lea.hbm %s379_s0, 256 }
  0x14   :  { %s16_s27 = sshll.u32 %s298_s26, 4  ;;  %p224_p8 = scmp.ne.s32.totalorder %s379_s0, %s223_s30  ;;  %s17_s27 = int_to_ptr.vmem [resolvable:$true] %s16_s27 }
  0x15   :  { %p227_p9 = scmp.lt.u32.totalorder %s223_s30, %s379_s0 }
  0x17   :  { %p229_p10 = pnand %p227_p9, %p224_p8 }
  0x19   :  { %232 = shalt.err (!%p229_p10)
}
  0x1a   :  { %s233_s8 = scalar_lea.vmem %s17_s27, 256  ;;  %p238_p12 = scmp.lt.s32.totalorder %s17_s27, %s17_s27 }
  0x1b   :  { %p234_p11 = scmp.ne.s32.totalorder %s17_s27, %s233_s8  ;;  %p239_p13 = scmp.lt.s32.totalorder %s233_s8, %s233_s8 }
  0x1d   :  { %p240_p0 = por %p239_p13, %p238_p12 }
  0x1f   :  { %p241_p1 = pnand %p240_p0, %p234_p11 }
  0x21   :  { %244 = shalt.err (!%p241_p1)
}
  0x22   :  { %s299_s1 = smov 128   ;;  %s300_s9 = smov 8  }
  0x23   :  { %22 = dma.hbm_to_vmem [thread:$0]  %s379_s0, 256, %s17_s27, [#allocation3], %s299_s1, %s299_s1, %s300_s9  }
  0x24   :  { %s301_s12 = smov [#allocation7]   ;;  %s245_s16 = scalar_lea.hbm %s381_s2, 16 }
  0x25   :  { %s41_s13 = sshll.u32 %s301_s12, 4  ;;  %p246_p2 = scmp.ne.s32.totalorder %s381_s2, %s245_s16  ;;  %s42_s13 = int_to_ptr.vmem [resolvable:$true] %s41_s13 }
  0x26   :  { %p249_p3 = scmp.lt.u32.totalorder %s245_s16, %s381_s2 }
  0x28   :  { %p251_p4 = pnand %p249_p3, %p246_p2 }
  0x2a   :  { %254 = shalt.err (!%p251_p4)
}
  0x2b   :  { %s255_s21 = scalar_lea.vmem %s42_s13, 16  ;;  %s259_s0 = scalar_lea.vmem %s42_s13, 32 }
  0x2c   :  { %p256_p5 = scmp.ne.s32.totalorder %s42_s13, %s255_s21  ;;  %p260_p6 = scmp.lt.s32.totalorder %s42_s13, %s42_s13 }
  0x2d   :  { %p261_p7 = scmp.lt.s32.totalorder %s259_s0, %s255_s21 }
  0x2f   :  { %p262_p8 = por %p261_p7, %p260_p6 }
  0x31   :  { %p263_p9 = pnand %p262_p8, %p256_p5 }
  0x33   :  { %266 = shalt.err (!%p263_p9)
}
  0x34   :  { %44 = dma.hbm_to_vmem [thread:$0]  %s381_s2, 16, %s42_s13, [#allocation6]  }
  0x35   :  { %289 = dma.done.wait [#allocation3], 256  }
  0x36   :  { %290 = vsyncadd [#allocation3], 4294967040 }
  0x37   :  { %291 = dma.done.wait [#allocation6], 272  }
  0x38   :  { %292 = vsyncadd [#allocation6], 4294967024  ;;  %v302_v0 = vmov 0.0   ;;  %vm303_vm0 = vmmov 0   ;;  %v191_v1 = vld [vmem:[#allocation5] sm:$0xff]   ;;  %v192_v2 = vld [vmem:[#allocation5 + $0x8] sm:$0xff]  }
  0x39   :  { %173 = vmatprep.subr.bf16.mxu0 %v302_v0  ;;  %177 = vmatprep.mubr.msk.bf16.mxu0 %vm303_vm0, %v302_v0  ;;  %v55_v3 = vld [vmem:[#allocation2] sm:$0xff]  ;;  %v56_v4 = vld [vmem:[#allocation2 + $0x8] sm:$0xff]  ;;  %vm81_vm1 = vcmask 261120   ;;  %s304_s2 = smov [#allocation8]  }
  0x3a   :  { %174 = vmatpush3.bf16.msra.mxu0 %v191_v1  ;;  %v57_v5 = vpack.c.bf16 %v56_v4, %v55_v3  ;;  %v166_v6 = vld [vmem:[#allocation7] ss:$0 sm:$0xff]  ;;  %s153_s24 = sshll.u32 %s304_s2, 4  ;;  %s154_s24 = int_to_ptr.vmem [resolvable:$true] %s153_s24 }
  0x3b   :  { %175 = vmatprep.subr.bf16.mxu0 %v302_v0  ;;  %s267_s25 = scalar_lea.vmem %s154_s24, 256  ;;  %p272_p11 = scmp.lt.s32.totalorder %s154_s24, %s154_s24 }
  0x3c   :  { %p268_p10 = scmp.ne.s32.totalorder %s154_s24, %s267_s25  ;;  %p273_p12 = scmp.lt.s32.totalorder %s267_s25, %s267_s25 }
  0x3e   :  { %176 = vmatpush3.bf16.msra.mxu0 %v192_v2  ;;  %p274_p13 = por %p273_p12, %p272_p11 }
  0x40   :  { %p275_p0 = pnand %p274_p13, %p268_p10 }
  0x41   :  { %178 = vmatmul.mubr.msk.bf16.vlgmr.msra.gmra.mrb[0].mxu0 %vm81_vm1, %v57_v5 }
 0x114   :  { %v119_v7 = vpop.f32.mrb[0].mxu0 }
 0x115   :  { %v120_v8 = vadd.f32 %v166_v6, %v119_v7  ;;  %v179_v9 = vpop.f32.mrb[1].mxu0 }
 0x116   :  { %v122_v10 = vpop.f32.mrb[2].mxu0 }
 0x117   :  { %126 = vmax.xlane.f32.xlu0 %v120_v8  ;;  %v180_v11 = vpop.f32.mrb[3].mxu0  ;;  %v123_v12 = vadd.f32 %v166_v6, %v122_v10 }
 0x11b   :  { %128 = vmax.xlane.f32.xlu0 %v123_v12 }
 0x1a4   :  { %v127_v13 = vpop.xlane.xlu0 %126 }
 0x1a5   :  { %v130_v14 = vsub.f32 %v120_v8, %v127_v13 }
 0x1a7   :  { %v132_v15 = vmul.f32 1.442695, %v130_v14 }
 0x1a8   :  { %v129_v16 = vpop.xlane.xlu0 %128 }
 0x1a9   :  { %v131_v17 = vsub.f32 %v123_v12, %v129_v16  ;;  %193 = vpow2.f32 %v132_v15 }
 0x1ab   :  { %v134_v18 = vmul.f32 1.442695, %v131_v17 }
 0x1ad   :  { %195 = vpow2.f32 %v134_v18 }
 0x1b3   :  { %v194_v19 = vpop.eup %193 }
 0x1b4   :  { %136 = vadd.xlane.f32.xlu1 %v194_v19 }
 0x1b7   :  { %v196_v20 = vpop.eup %195 }
 0x1b8   :  { %138 = vadd.xlane.f32.xlu1 %v196_v20 }
 0x241   :  { %v137_v21 = vpop.xlane.xlu1 %136 }
 0x242   :  { %197 = vlog2.f32 %v137_v21 }
 0x245   :  { %v139_v22 = vpop.xlane.xlu1 %138 }
 0x246   :  { %199 = vlog2.f32 %v139_v22 }
 0x24c   :  { %v198_v23 = vpop.eup %197 }
 0x24d   :  { %v141_v24 = vmul.f32 0.6931472, %v198_v23 }
 0x24f   :  { %v144_v25 = vsub.f32 %v130_v14, %v141_v24 }
 0x250   :  { %v200_v26 = vpop.eup %199 }
 0x251   :  { %146 = vst [vmem:[#allocation8] sm:$0xff] %v144_v25  ;;  %v143_v27 = vmul.f32 0.6931472, %v200_v26 }
 0x253   :  { %v145_v28 = vsub.f32 %v131_v17, %v143_v27 }
 0x255   :  { %147 = vst [vmem:[#allocation8 + $0x8] sm:$0xff] %v145_v28 }
 0x256   :  { %278 = shalt.err (!%p275_p0)
}
 0x257   :  { %s279_s28 = scalar_lea.hbm %s382_s3, 256 }
 0x258   :  { %p280_p1 = scmp.ne.s32.totalorder %s382_s3, %s279_s28  ;;  %p283_p2 = scmp.lt.u32.totalorder %s279_s28, %s382_s3 }
 0x25a   :  { %p285_p3 = pnand %p283_p2, %p280_p1 }
 0x25c   :  { %288 = shalt.err (!%p285_p3)
}
 0x25d   :  { %159 = dma.vmem_to_hbm [thread:$0]  %s154_s24, 256, %s382_s3, [#allocation4], %s299_s1, %s299_s1, %s300_s9  }
 0x25e   :  { %293 = dma.done.wait [#allocation4], 256  }
 0x25f   :  { %294 = vsyncadd [#allocation4], 4294967040 }
 0x260   :  { %163 = vsyncpa [#allocation3], 1 }
 0x261   :  { %164 = vsyncpa [#allocation6], 1 }
 0x262   :  { %165 = vsyncpa [#allocation4], 1 }

</bundles_post_ra>
